<compile_context>
chip_gen: v7x
topology: tpu7x:2x2x1
jax: 0.10.0
libtpu: 0.0.40
codegen_flags: <defaults>
</compile_context>

<pallas_src>
import jax
import jax.numpy as jnp
from jax.experimental import pallas as pl
from jax.experimental.pallas import tpu as pltpu


def _mla_fused_kernel(x_ref, xh_ref, wp_ref, wf_ref, out_ref, acc_ref):
    """One (batch b, row-tile t, level g) grid step.

    x_ref  : (TH, W, Cin)      bf16  rows of input level L-1-g for this tile
    xh_ref : (2,  W, Cin)      bf16  halo rows (above / below; zero at borders)
    wp_ref : (Cin, Cout)       bf16  1x1 projection weight of level L-1-g
    wf_ref : (9, Cout, Cout)   bf16  3x3 conv weight of level g, tap-major
    out_ref: (TH, W, Cout)           output rows of level g
    acc_ref: (TH+2, W+2, Cout) f32   zero-halo running cumulative sum ("mid")
    """
    g = pl.program_id(2)
    TH, W, Cin = x_ref.shape
    Cout = out_ref.shape[-1]

    @pl.when(g == 0)
    def _():
        # New (b, t) tile starts: reset the cumulative sum.  The halo columns
        # (W axis) are never written afterwards, so they stay zero (= padding).
        acc_ref[...] = jnp.zeros_like(acc_ref)

    wp = wp_ref[...]

    # ---- 1x1 projection of level L-1-g (bf16 operands, f32 accumulate) -----
    feat = jnp.dot(x_ref[...].reshape(TH * W, Cin), wp,
                   preferred_element_type=jnp.float32).reshape(TH, W, Cout)
    acc_ref[1:TH + 1, 1:W + 1, :] = acc_ref[1:TH + 1, 1:W + 1, :] + feat

    # Halo rows: re-projected per tile so row tiles stay independent/parallel.
    fh = jnp.dot(xh_ref[...].reshape(2 * W, Cin), wp,
                 preferred_element_type=jnp.float32).reshape(2, W, Cout)
    acc_ref[0:1, 1:W + 1, :] = acc_ref[0:1, 1:W + 1, :] + fh[0:1]
    acc_ref[TH + 1:TH + 2, 1:W + 1, :] = (
        acc_ref[TH + 1:TH + 2, 1:W + 1, :] + fh[1:2])

    # ---- 3x3 "SAME" conv of mid: 9 unrolled accumulating matmuls (K=Cout) ---
    # (No materialized 9*Cout im2col buffer / lane-axis concat.)
    mid = acc_ref[...].astype(jnp.bfloat16)            # (TH+2, W+2, Cout)
    o = jnp.zeros((TH * W, Cout), jnp.float32)
    k = 0
    for ky in range(3):
        for kx in range(3):
            tap = mid[ky:ky + TH, kx:kx + W, :].reshape(TH * W, Cout)
            o = o + jnp.dot(tap, wf_ref[k], preferred_element_type=jnp.float32)
            k += 1
    out_ref[...] = o.reshape(TH, W, Cout).astype(out_ref.dtype)


def mla_module_forward(inputs_nhwc, w_proj, w_feat, *, row_tile=None,
                       out_dtype=jnp.float32):
    """inputs_nhwc: list of L arrays (B, H, W, Cin)   [NHWC; no relayout pass]
       w_proj:      (L, Cin, Cout)       (conv1x1 OIHW weight, (Cout,Cin,1,1).T)
       w_feat:      (L, 9, Cout, Cout)   (conv3x3 OIHW -> HWIO, taps flattened)
       returns tuple of L arrays (B, H, W, Cout) in `out_dtype` (NHWC)."""
    L = len(inputs_nhwc)
    xs = jnp.stack(inputs_nhwc).astype(jnp.bfloat16)       # (L, B, H, W, Cin)
    _, B, H, W, Cin = xs.shape
    Cout = w_proj.shape[-1]

    if row_tile is None:
        row_tile = next(t for t in (16, 8, 4, 2, 1) if H % t == 0)
    TH = int(row_tile)
    assert H % TH == 0, "row_tile must divide H"
    NH = H // TH

    # Halo rows per tile: the row above and below each tile (zero outside the
    # image).  Only 2*NH rows per level are gathered -- not a full-tensor pass.
    idx_top = jnp.arange(NH) * TH - 1
    idx_bot = jnp.arange(NH) * TH + TH
    top = jnp.take(xs, jnp.clip(idx_top, 0, H - 1), axis=2)
    top = jnp.where((idx_top >= 0)[None, None, :, None, None], top, 0)
    bot = jnp.take(xs, jnp.clip(idx_bot, 0, H - 1), axis=2)
    bot = jnp.where((idx_bot < H)[None, None, :, None, None], bot, 0)
    xs_halo = jnp.stack([top, bot], axis=3)                 # (L, B, NH, 2, W, Cin)

    wp = w_proj.astype(jnp.bfloat16)                        # (L, Cin, Cout)
    wf = w_feat.astype(jnp.bfloat16)                        # (L, 9, Cout, Cout)

    # Per-step VMEM footprint (double-buffered ins/outs + scratch + temps),
    # with headroom, capped at 64 MiB so the same setting is legal on v7x.
    out_b = jnp.dtype(out_dtype).itemsize
    est = (2 * TH * W * Cin * 2            # x block (bf16, double-buffered)
           + 2 * 2 * W * Cin * 2           # halo block
           + 2 * Cin * Cout * 2            # per-level 1x1 weight
           + 2 * 9 * Cout * Cout * 2       # per-level 3x3 weight
           + 2 * TH * W * Cout * out_b     # output block
           + (TH + 2) * (W + 2) * Cout * (4 + 2)   # f32 acc + bf16 mid temp
           + 2 * TH * W * Cout * 4)        # conv accumulator + tap temp
    vmem_limit = int(min(64 * 2 ** 20, max(16 * 2 ** 20, 4 * est)))

    outs = pl.pallas_call(
        _mla_fused_kernel,
        out_shape=jax.ShapeDtypeStruct((L, B, H, W, Cout), out_dtype),
        grid_spec=pltpu.PrefetchScalarGridSpec(
            num_scalar_prefetch=0,
            grid=(B, NH, L),
            in_specs=[
                # activations: walk levels in reverse for the cumulative sum
                pl.BlockSpec((None, None, TH, W, Cin),
                             lambda b, t, g: (L - 1 - g, b, t, 0, 0)),
                pl.BlockSpec((None, None, None, 2, W, Cin),
                             lambda b, t, g: (L - 1 - g, b, t, 0, 0, 0)),
                # per-level weight blocks (prefetched during previous compute)
                pl.BlockSpec((None, Cin, Cout),
                             lambda b, t, g: (L - 1 - g, 0, 0)),
                pl.BlockSpec((None, 9, Cout, Cout),
                             lambda b, t, g: (g, 0, 0, 0)),
            ],
            out_specs=pl.BlockSpec((None, None, TH, W, Cout),
                                   lambda b, t, g: (g, b, t, 0, 0)),
            scratch_shapes=[pltpu.VMEM((TH + 2, W + 2, Cout), jnp.float32)],
        ),
        compiler_params=pltpu.CompilerParams(
            dimension_semantics=("parallel", "parallel", "arbitrary"),
            vmem_limit_bytes=vmem_limit),
    )(xs, xs_halo, wp, wf)

    return tuple(outs[i] for i in range(L))


def _reference_forward(inputs_nhwc, w1_hwio, w2_hwio):
    """Pure-JAX (lax.conv, f32, NHWC) reference of the PyTorch module."""
    dn = ('NHWC', 'HWIO', 'NHWC')
    feats = [jax.lax.conv_general_dilated(x, w, (1, 1), 'VALID',
                                          dimension_numbers=dn)
             for x, w in zip(inputs_nhwc, w1_hwio)]
    feats = feats[::-1]
    mids = []
    for f in feats:
        mids.append(f if not mids else mids[-1] + f)
    outs = [jax.lax.conv_general_dilated(m, w, (1, 1), 'SAME',
                                         dimension_numbers=dn)
            for m, w in zip(mids, w2_hwio)]
    return tuple(outs)


if __name__ == "__main__":
    # Small, module-consistent shapes: L=4 levels, B=2, Cin=Cout=32, 16x16,
    # row_tile=8 so the halo / row-tiling / parallel-axis path is exercised.
    L, B, Cin, Cout, H, W = 4, 2, 32, 32, 16, 16

    key = jax.random.PRNGKey(0)
    keys = jax.random.split(key, 3 * L)

    inputs = [jax.random.normal(keys[i], (B, H, W, Cin), jnp.float32)
              for i in range(L)]
    # Deterministic synthetic parameters in PyTorch conv weight layout (OIHW).
    w1_oihw = [0.1 * jax.random.normal(keys[L + i], (Cout, Cin, 1, 1),
                                       jnp.float32) for i in range(L)]
    w2_oihw = [0.1 * jax.random.normal(keys[2 * L + i], (Cout, Cout, 3, 3),
                                       jnp.float32) for i in range(L)]

    # Repack weights for the NHWC kernel.
    w_proj = jnp.stack([w[:, :, 0, 0].T for w in w1_oihw])          # (L, Cin, Cout)
    w_feat = jnp.stack([jnp.transpose(w, (2, 3, 1, 0))              # OIHW -> HWIO
                        .reshape(9, Cout, Cout) for w in w2_oihw])  # (L, 9, Cout, Cout)

    outs = mla_module_forward(inputs, w_proj, w_feat, row_tile=8)
    outs = jax.block_until_ready(outs)

    w1_hwio = [jnp.transpose(w, (2, 3, 1, 0)) for w in w1_oihw]
    w2_hwio = [jnp.transpose(w, (2, 3, 1, 0)) for w in w2_oihw]
    refs = _reference_forward(inputs, w1_hwio, w2_hwio)

    for o, r in zip(outs, refs):
        assert o.shape == r.shape and o.dtype == r.dtype
        # bf16 matmul operands with f32 accumulation: 2% relative tolerance.
        scale = float(jnp.maximum(jnp.max(jnp.abs(r)), 1.0))
        err = float(jnp.max(jnp.abs(o - r))) / scale
        if err > 2e-2:
            raise AssertionError(
                f"Pallas MLA output mismatch vs reference (rel err {err:.4f})")

    print("KERNEL_OK")
</pallas_src>

<mosaic_0001>
module attributes {stable_mosaic.version = 11 : i64} {
  func.func @_mla_fused_kernel(%arg0: i32, %arg1: i32, %arg2: i32, %arg3: memref<1x1x8x16x32xbf16, #tpu.memory_space<vmem>>, %arg4: memref<1x1x1x2x16x32xbf16, #tpu.memory_space<vmem>>, %arg5: memref<1x32x32xbf16, #tpu.memory_space<vmem>>, %arg6: memref<1x9x32x32xbf16, #tpu.memory_space<vmem>>, %arg7: memref<1x1x8x16x32xf32, #tpu.memory_space<vmem>>, %arg8: memref<10x18x32xf32, #tpu.memory_space<vmem>>) attributes {dimension_semantics = [#tpu.dimension_semantics<parallel>, #tpu.dimension_semantics<parallel>, #tpu.dimension_semantics<arbitrary>], iteration_bounds = array<i64: 2, 2, 4>, scalar_prefetch = 0 : i64, scratch_operands = 1 : i64, tpu.core_type = #tpu.core_type<tc>, window_params = [{transform_indices = @transform_0, window_bounds = array<i64: 1, 1, 8, 16, 32>}, {transform_indices = @transform_1, window_bounds = array<i64: 1, 1, 1, 2, 16, 32>}, {transform_indices = @transform_2, window_bounds = array<i64: 1, 32, 32>}, {transform_indices = @transform_3, window_bounds = array<i64: 1, 9, 32, 32>}, {transform_indices = @transform_4, window_bounds = array<i64: 1, 1, 8, 16, 32>}]} {
    %c0_i32 = arith.constant 0 : i32
    %0 = arith.cmpi eq, %arg2, %c0_i32 : i32
    %1 = arith.extui %0 : i1 to i32
    %c0_i32_0 = arith.constant 0 : i32
    %2 = arith.cmpi ne, %1, %c0_i32_0 : i32
    scf.if %2 {
      %cst_78 = arith.constant 0.000000e+00 : f32
      %87 = vector.broadcast %cst_78 : f32 to vector<10x18x32xf32>
      %c0_79 = arith.constant 0 : index
      %c0_80 = arith.constant 0 : index
      %c0_81 = arith.constant 0 : index
      %88 = vector.load %arg8[%c0_79, %c0_80, %c0_81] : memref<10x18x32xf32, #tpu.memory_space<vmem>>, vector<10x18x32xf32>
      tpu.vector_store %arg8[%c0_79, %c0_80, %c0_81], %87 {strides = array<i32>} : memref<10x18x32xf32, #tpu.memory_space<vmem>>, vector<10x18x32xf32>,
    } else {
    }
    %c0 = arith.constant 0 : index
    %c0_1 = arith.constant 0 : index
    %c0_2 = arith.constant 0 : index
    %3 = vector.load %arg5[%c0, %c0_1, %c0_2] : memref<1x32x32xbf16, #tpu.memory_space<vmem>>, vector<1x32x32xbf16>
    %4 = vector.shape_cast %3 : vector<1x32x32xbf16> to vector<32x32xbf16>
    %c0_3 = arith.constant 0 : index
    %c0_4 = arith.constant 0 : index
    %c0_5 = arith.constant 0 : index
    %c0_6 = arith.constant 0 : index
    %c0_7 = arith.constant 0 : index
    %5 = vector.load %arg3[%c0_3, %c0_4, %c0_5, %c0_6, %c0_7] : memref<1x1x8x16x32xbf16, #tpu.memory_space<vmem>>, vector<1x1x8x16x32xbf16>
    %6 = vector.shape_cast %5 : vector<1x1x8x16x32xbf16> to vector<8x16x32xbf16>
    %7 = vector.shape_cast %6 : vector<8x16x32xbf16> to vector<128x32xbf16>
    %cst = arith.constant dense<0.000000e+00> : vector<128x32xf32>
    %8 = tpu.matmul %7, %4, %cst {dimension_numbers = #tpu.dot_dimension_numbers<[1], [0], [0], [1], [0, 0, 1, 1], [], []>} : vector<128x32xbf16>, vector<32x32xbf16>, vector<128x32xf32> -> vector<128x32xf32>
    %9 = vector.shape_cast %8 : vector<128x32xf32> to vector<8x16x32xf32>
    %c1 = arith.constant 1 : index
    %c1_8 = arith.constant 1 : index
    %c0_9 = arith.constant 0 : index
    %10 = vector.load %arg8[%c1, %c1_8, %c0_9] : memref<10x18x32xf32, #tpu.memory_space<vmem>>, vector<8x16x32xf32>
    %11 = arith.addf %10, %9 : vector<8x16x32xf32>
    %c1_10 = arith.constant 1 : index
    %c1_11 = arith.constant 1 : index
    %c0_12 = arith.constant 0 : index
    %12 = vector.load %arg8[%c1_10, %c1_11, %c0_12] : memref<10x18x32xf32, #tpu.memory_space<vmem>>, vector<8x16x32xf32>
    tpu.vector_store %arg8[%c1_10, %c1_11, %c0_12], %11 {strides = array<i32>} : memref<10x18x32xf32, #tpu.memory_space<vmem>>, vector<8x16x32xf32>,
    %c0_13 = arith.constant 0 : index
    %c0_14 = arith.constant 0 : index
    %c0_15 = arith.constant 0 : index
    %c0_16 = arith.constant 0 : index
    %c0_17 = arith.constant 0 : index
    %c0_18 = arith.constant 0 : index
    %13 = vector.load %arg4[%c0_13, %c0_14, %c0_15, %c0_16, %c0_17, %c0_18] : memref<1x1x1x2x16x32xbf16, #tpu.memory_space<vmem>>, vector<1x1x1x2x16x32xbf16>
    %14 = vector.shape_cast %13 : vector<1x1x1x2x16x32xbf16> to vector<2x16x32xbf16>
    %15 = vector.shape_cast %14 : vector<2x16x32xbf16> to vector<32x32xbf16>
    %cst_19 = arith.constant dense<0.000000e+00> : vector<32x32xf32>
    %16 = tpu.matmul %15, %4, %cst_19 {dimension_numbers = #tpu.dot_dimension_numbers<[1], [0], [0], [1], [0, 0, 1, 1], [], []>} : vector<32x32xbf16>, vector<32x32xbf16>, vector<32x32xf32> -> vector<32x32xf32>
    %17 = vector.shape_cast %16 : vector<32x32xf32> to vector<2x16x32xf32>
    %c0_20 = arith.constant 0 : index
    %c1_21 = arith.constant 1 : index
    %c0_22 = arith.constant 0 : index
    %18 = vector.load %arg8[%c0_20, %c1_21, %c0_22] : memref<10x18x32xf32, #tpu.memory_space<vmem>>, vector<1x16x32xf32>
    %19 = vector.extract_strided_slice %17 {offsets = [0, 0, 0], sizes = [1, 16, 32], strides = [1, 1, 1]} : vector<2x16x32xf32> to vector<1x16x32xf32>
    %20 = arith.addf %18, %19 : vector<1x16x32xf32>
    %c0_23 = arith.constant 0 : index
    %c1_24 = arith.constant 1 : index
    %c0_25 = arith.constant 0 : index
    %21 = vector.load %arg8[%c0_23, %c1_24, %c0_25] : memref<10x18x32xf32, #tpu.memory_space<vmem>>, vector<1x16x32xf32>
    tpu.vector_store %arg8[%c0_23, %c1_24, %c0_25], %20 {strides = array<i32>} : memref<10x18x32xf32, #tpu.memory_space<vmem>>, vector<1x16x32xf32>,
    %c9 = arith.constant 9 : index
    %c1_26 = arith.constant 1 : index
    %c0_27 = arith.constant 0 : index
    %22 = vector.load %arg8[%c9, %c1_26, %c0_27] : memref<10x18x32xf32, #tpu.memory_space<vmem>>, vector<1x16x32xf32>
    %23 = vector.extract_strided_slice %17 {offsets = [1, 0, 0], sizes = [1, 16, 32], strides = [1, 1, 1]} : vector<2x16x32xf32> to vector<1x16x32xf32>
    %24 = arith.addf %22, %23 : vector<1x16x32xf32>
    %c9_28 = arith.constant 9 : index
    %c1_29 = arith.constant 1 : index
    %c0_30 = arith.constant 0 : index
    %25 = vector.load %arg8[%c9_28, %c1_29, %c0_30] : memref<10x18x32xf32, #tpu.memory_space<vmem>>, vector<1x16x32xf32>
    tpu.vector_store %arg8[%c9_28, %c1_29, %c0_30], %24 {strides = array<i32>} : memref<10x18x32xf32, #tpu.memory_space<vmem>>, vector<1x16x32xf32>,
    %c0_31 = arith.constant 0 : index
    %c0_32 = arith.constant 0 : index
    %c0_33 = arith.constant 0 : index
    %26 = vector.load %arg8[%c0_31, %c0_32, %c0_33] : memref<10x18x32xf32, #tpu.memory_space<vmem>>, vector<10x18x32xf32>
    %27 = arith.truncf %26 : vector<10x18x32xf32> to vector<10x18x32xbf16>
    %cst_34 = arith.constant 0.000000e+00 : f32
    %28 = vector.broadcast %cst_34 : f32 to vector<128x32xf32>
    %29 = vector.extract_strided_slice %27 {offsets = [0, 0, 0], sizes = [8, 16, 32], strides = [1, 1, 1]} : vector<10x18x32xbf16> to vector<8x16x32xbf16>
    %30 = vector.shape_cast %29 : vector<8x16x32xbf16> to vector<128x32xbf16>
    %c0_35 = arith.constant 0 : index
    %c0_36 = arith.constant 0 : index
    %c0_37 = arith.constant 0 : index
    %c0_38 = arith.constant 0 : index
    %31 = vector.load %arg6[%c0_35, %c0_36, %c0_37, %c0_38] : memref<1x9x32x32xbf16, #tpu.memory_space<vmem>>, vector<1x1x32x32xbf16>
    %32 = vector.shape_cast %31 : vector<1x1x32x32xbf16> to vector<32x32xbf16>
    %cst_39 = arith.constant dense<0.000000e+00> : vector<128x32xf32>
    %33 = tpu.matmul %30, %32, %cst_39 {dimension_numbers = #tpu.dot_dimension_numbers<[1], [0], [0], [1], [0, 0, 1, 1], [], []>} : vector<128x32xbf16>, vector<32x32xbf16>, vector<128x32xf32> -> vector<128x32xf32>
    %34 = arith.addf %28, %33 : vector<128x32xf32>
    %35 = vector.extract_strided_slice %27 {offsets = [0, 1, 0], sizes = [8, 16, 32], strides = [1, 1, 1]} : vector<10x18x32xbf16> to vector<8x16x32xbf16>
    %36 = vector.shape_cast %35 : vector<8x16x32xbf16> to vector<128x32xbf16>
    %c0_40 = arith.constant 0 : index
    %c1_41 = arith.constant 1 : index
    %c0_42 = arith.constant 0 : index
    %c0_43 = arith.constant 0 : index
    %37 = vector.load %arg6[%c0_40, %c1_41, %c0_42, %c0_43] : memref<1x9x32x32xbf16, #tpu.memory_space<vmem>>, vector<1x1x32x32xbf16>
    %38 = vector.shape_cast %37 : vector<1x1x32x32xbf16> to vector<32x32xbf16>
    %cst_44 = arith.constant dense<0.000000e+00> : vector<128x32xf32>
    %39 = tpu.matmul %36, %38, %cst_44 {dimension_numbers = #tpu.dot_dimension_numbers<[1], [0], [0], [1], [0, 0, 1, 1], [], []>} : vector<128x32xbf16>, vector<32x32xbf16>, vector<128x32xf32> -> vector<128x32xf32>
    %40 = arith.addf %34, %39 : vector<128x32xf32>
    %41 = vector.extract_strided_slice %27 {offsets = [0, 2, 0], sizes = [8, 16, 32], strides = [1, 1, 1]} : vector<10x18x32xbf16> to vector<8x16x32xbf16>
    %42 = vector.shape_cast %41 : vector<8x16x32xbf16> to vector<128x32xbf16>
    %c0_45 = arith.constant 0 : index
    %c2 = arith.constant 2 : index
    %c0_46 = arith.constant 0 : index
    %c0_47 = arith.constant 0 : index
    %43 = vector.load %arg6[%c0_45, %c2, %c0_46, %c0_47] : memref<1x9x32x32xbf16, #tpu.memory_space<vmem>>, vector<1x1x32x32xbf16>
    %44 = vector.shape_cast %43 : vector<1x1x32x32xbf16> to vector<32x32xbf16>
    %cst_48 = arith.constant dense<0.000000e+00> : vector<128x32xf32>
    %45 = tpu.matmul %42, %44, %cst_48 {dimension_numbers = #tpu.dot_dimension_numbers<[1], [0], [0], [1], [0, 0, 1, 1], [], []>} : vector<128x32xbf16>, vector<32x32xbf16>, vector<128x32xf32> -> vector<128x32xf32>
    %46 = arith.addf %40, %45 : vector<128x32xf32>
    %47 = vector.extract_strided_slice %27 {offsets = [1, 0, 0], sizes = [8, 16, 32], strides = [1, 1, 1]} : vector<10x18x32xbf16> to vector<8x16x32xbf16>
    %48 = vector.shape_cast %47 : vector<8x16x32xbf16> to vector<128x32xbf16>
    %c0_49 = arith.constant 0 : index
    %c3 = arith.constant 3 : index
    %c0_50 = arith.constant 0 : index
    %c0_51 = arith.constant 0 : index
    %49 = vector.load %arg6[%c0_49, %c3, %c0_50, %c0_51] : memref<1x9x32x32xbf16, #tpu.memory_space<vmem>>, vector<1x1x32x32xbf16>
    %50 = vector.shape_cast %49 : vector<1x1x32x32xbf16> to vector<32x32xbf16>
    %cst_52 = arith.constant dense<0.000000e+00> : vector<128x32xf32>
    %51 = tpu.matmul %48, %50, %cst_52 {dimension_numbers = #tpu.dot_dimension_numbers<[1], [0], [0], [1], [0, 0, 1, 1], [], []>} : vector<128x32xbf16>, vector<32x32xbf16>, vector<128x32xf32> -> vector<128x32xf32>
    %52 = arith.addf %46, %51 : vector<128x32xf32>
    %53 = vector.extract_strided_slice %27 {offsets = [1, 1, 0], sizes = [8, 16, 32], strides = [1, 1, 1]} : vector<10x18x32xbf16> to vector<8x16x32xbf16>
    %54 = vector.shape_cast %53 : vector<8x16x32xbf16> to vector<128x32xbf16>
    %c0_53 = arith.constant 0 : index
    %c4 = arith.constant 4 : index
    %c0_54 = arith.constant 0 : index
    %c0_55 = arith.constant 0 : index
    %55 = vector.load %arg6[%c0_53, %c4, %c0_54, %c0_55] : memref<1x9x32x32xbf16, #tpu.memory_space<vmem>>, vector<1x1x32x32xbf16>
    %56 = vector.shape_cast %55 : vector<1x1x32x32xbf16> to vector<32x32xbf16>
    %cst_56 = arith.constant dense<0.000000e+00> : vector<128x32xf32>
    %57 = tpu.matmul %54, %56, %cst_56 {dimension_numbers = #tpu.dot_dimension_numbers<[1], [0], [0], [1], [0, 0, 1, 1], [], []>} : vector<128x32xbf16>, vector<32x32xbf16>, vector<128x32xf32> -> vector<128x32xf32>
    %58 = arith.addf %52, %57 : vector<128x32xf32>
    %59 = vector.extract_strided_slice %27 {offsets = [1, 2, 0], sizes = [8, 16, 32], strides = [1, 1, 1]} : vector<10x18x32xbf16> to vector<8x16x32xbf16>
    %60 = vector.shape_cast %59 : vector<8x16x32xbf16> to vector<128x32xbf16>
    %c0_57 = arith.constant 0 : index
    %c5 = arith.constant 5 : index
    %c0_58 = arith.constant 0 : index
    %c0_59 = arith.constant 0 : index
    %61 = vector.load %arg6[%c0_57, %c5, %c0_58, %c0_59] : memref<1x9x32x32xbf16, #tpu.memory_space<vmem>>, vector<1x1x32x32xbf16>
    %62 = vector.shape_cast %61 : vector<1x1x32x32xbf16> to vector<32x32xbf16>
    %cst_60 = arith.constant dense<0.000000e+00> : vector<128x32xf32>
    %63 = tpu.matmul %60, %62, %cst_60 {dimension_numbers = #tpu.dot_dimension_numbers<[1], [0], [0], [1], [0, 0, 1, 1], [], []>} : vector<128x32xbf16>, vector<32x32xbf16>, vector<128x32xf32> -> vector<128x32xf32>
    %64 = arith.addf %58, %63 : vector<128x32xf32>
    %65 = vector.extract_strided_slice %27 {offsets = [2, 0, 0], sizes = [8, 16, 32], strides = [1, 1, 1]} : vector<10x18x32xbf16> to vector<8x16x32xbf16>
    %66 = vector.shape_cast %65 : vector<8x16x32xbf16> to vector<128x32xbf16>
    %c0_61 = arith.constant 0 : index
    %c6 = arith.constant 6 : index
    %c0_62 = arith.constant 0 : index
    %c0_63 = arith.constant 0 : index
    %67 = vector.load %arg6[%c0_61, %c6, %c0_62, %c0_63] : memref<1x9x32x32xbf16, #tpu.memory_space<vmem>>, vector<1x1x32x32xbf16>
    %68 = vector.shape_cast %67 : vector<1x1x32x32xbf16> to vector<32x32xbf16>
    %cst_64 = arith.constant dense<0.000000e+00> : vector<128x32xf32>
    %69 = tpu.matmul %66, %68, %cst_64 {dimension_numbers = #tpu.dot_dimension_numbers<[1], [0], [0], [1], [0, 0, 1, 1], [], []>} : vector<128x32xbf16>, vector<32x32xbf16>, vector<128x32xf32> -> vector<128x32xf32>
    %70 = arith.addf %64, %69 : vector<128x32xf32>
    %71 = vector.extract_strided_slice %27 {offsets = [2, 1, 0], sizes = [8, 16, 32], strides = [1, 1, 1]} : vector<10x18x32xbf16> to vector<8x16x32xbf16>
    %72 = vector.shape_cast %71 : vector<8x16x32xbf16> to vector<128x32xbf16>
    %c0_65 = arith.constant 0 : index
    %c7 = arith.constant 7 : index
    %c0_66 = arith.constant 0 : index
    %c0_67 = arith.constant 0 : index
    %73 = vector.load %arg6[%c0_65, %c7, %c0_66, %c0_67] : memref<1x9x32x32xbf16, #tpu.memory_space<vmem>>, vector<1x1x32x32xbf16>
    %74 = vector.shape_cast %73 : vector<1x1x32x32xbf16> to vector<32x32xbf16>
    %cst_68 = arith.constant dense<0.000000e+00> : vector<128x32xf32>
    %75 = tpu.matmul %72, %74, %cst_68 {dimension_numbers = #tpu.dot_dimension_numbers<[1], [0], [0], [1], [0, 0, 1, 1], [], []>} : vector<128x32xbf16>, vector<32x32xbf16>, vector<128x32xf32> -> vector<128x32xf32>
    %76 = arith.addf %70, %75 : vector<128x32xf32>
    %77 = vector.extract_strided_slice %27 {offsets = [2, 2, 0], sizes = [8, 16, 32], strides = [1, 1, 1]} : vector<10x18x32xbf16> to vector<8x16x32xbf16>
    %78 = vector.shape_cast %77 : vector<8x16x32xbf16> to vector<128x32xbf16>
    %c0_69 = arith.constant 0 : index
    %c8 = arith.constant 8 : index
    %c0_70 = arith.constant 0 : index
    %c0_71 = arith.constant 0 : index
    %79 = vector.load %arg6[%c0_69, %c8, %c0_70, %c0_71] : memref<1x9x32x32xbf16, #tpu.memory_space<vmem>>, vector<1x1x32x32xbf16>
    %80 = vector.shape_cast %79 : vector<1x1x32x32xbf16> to vector<32x32xbf16>
    %cst_72 = arith.constant dense<0.000000e+00> : vector<128x32xf32>
    %81 = tpu.matmul %78, %80, %cst_72 {dimension_numbers = #tpu.dot_dimension_numbers<[1], [0], [0], [1], [0, 0, 1, 1], [], []>} : vector<128x32xbf16>, vector<32x32xbf16>, vector<128x32xf32> -> vector<128x32xf32>
    %82 = arith.addf %76, %81 : vector<128x32xf32>
    %83 = vector.shape_cast %82 : vector<128x32xf32> to vector<8x16x32xf32>
    %c0_73 = arith.constant 0 : index
    %c0_74 = arith.constant 0 : index
    %c0_75 = arith.constant 0 : index
    %c0_76 = arith.constant 0 : index
    %c0_77 = arith.constant 0 : index
    %84 = vector.load %arg7[%c0_73, %c0_74, %c0_75, %c0_76, %c0_77] : memref<1x1x8x16x32xf32, #tpu.memory_space<vmem>>, vector<1x1x8x16x32xf32>
    %85 = vector.shape_cast %84 : vector<1x1x8x16x32xf32> to vector<8x16x32xf32>
    %86 = vector.shape_cast %83 : vector<8x16x32xf32> to vector<1x1x8x16x32xf32>
    tpu.vector_store %arg7[%c0_73, %c0_74, %c0_75, %c0_76, %c0_77], %86 {strides = array<i32>} : memref<1x1x8x16x32xf32, #tpu.memory_space<vmem>>, vector<1x1x8x16x32xf32>,
    return
  }
  func.func @transform_0(%arg0: i32, %arg1: i32, %arg2: i32) -> (i32, i32, i32, i32, i32) {
    %c3_i32 = arith.constant 3 : i32
    %0 = arith.subi %c3_i32, %arg2 : i32
    %c0_i32 = arith.constant 0 : i32
    %c0_i32_0 = arith.constant 0 : i32
    %c0_i32_1 = arith.constant 0 : i32
    return %0, %arg0, %arg1, %c0_i32, %c0_i32_0 : i32, i32, i32, i32, i32
  }
  func.func @transform_1(%arg0: i32, %arg1: i32, %arg2: i32) -> (i32, i32, i32, i32, i32, i32) {
    %c3_i32 = arith.constant 3 : i32
    %0 = arith.subi %c3_i32, %arg2 : i32
    %c0_i32 = arith.constant 0 : i32
    %c0_i32_0 = arith.constant 0 : i32
    %c0_i32_1 = arith.constant 0 : i32
    %c0_i32_2 = arith.constant 0 : i32
    return %0, %arg0, %arg1, %c0_i32, %c0_i32_0, %c0_i32_1 : i32, i32, i32, i32, i32, i32
  }
  func.func @transform_2(%arg0: i32, %arg1: i32, %arg2: i32) -> (i32, i32, i32) {
    %c3_i32 = arith.constant 3 : i32
    %0 = arith.subi %c3_i32, %arg2 : i32
    %c0_i32 = arith.constant 0 : i32
    %c0_i32_0 = arith.constant 0 : i32
    %c0_i32_1 = arith.constant 0 : i32
    return %0, %c0_i32, %c0_i32_0 : i32, i32, i32
  }
  func.func @transform_3(%arg0: i32, %arg1: i32, %arg2: i32) -> (i32, i32, i32, i32) {
    %c0_i32 = arith.constant 0 : i32
    %c0_i32_0 = arith.constant 0 : i32
    %c0_i32_1 = arith.constant 0 : i32
    %c0_i32_2 = arith.constant 0 : i32
    return %arg2, %c0_i32, %c0_i32_0, %c0_i32_1 : i32, i32, i32, i32
  }
  func.func @transform_4(%arg0: i32, %arg1: i32, %arg2: i32) -> (i32, i32, i32, i32, i32) {
    %c0_i32 = arith.constant 0 : i32
    %c0_i32_0 = arith.constant 0 : i32
    %c0_i32_1 = arith.constant 0 : i32
    return %arg2, %arg0, %arg1, %c0_i32, %c0_i32_0 : i32, i32, i32, i32, i32
  }
}

</mosaic_0001>

<bundles_post_ra>
// kernel: tpu_custom_call.1
= control target key start
LH: loop header
LB: loop body
LE: loop exit
PB: predicated region body
PF: predicated region fallthrough
CT: control target
= control target key end

     0   :  { %s4532_s0 = inlined_call_operand.hbm [shape: bf16[4,2,16,16,32], index: 0, kind: input, shape index: {}]   ;;  %s4533_s1 = inlined_call_operand.hbm [shape: bf16[4,2,2,2,16,32], index: 1, kind: input, shape index: {}]   ;;  %s4534_s2 = inlined_call_operand.hbm [shape: bf16[4,32,32], index: 2, kind: input, shape index: {}]   ;;  %s4535_s3 = inlined_call_operand.hbm [shape: bf16[4,9,32,32], index: 3, kind: input, shape index: {}]   ;;  %s4536_s4 = inlined_call_operand.hbm [shape: f32[4,2,16,16,32], index: 4, kind: output, shape index: {}]  }
   0x1   :  { %4566 = sst [smem:[#allocation36_spill]] %s4533_s1 }
   0x2   :  { %4567 = sst [smem:[#allocation37_spill]] %s4535_s3 }
   0x3   :  { %4568 = sst [smem:[#allocation38_spill]] %s4536_s4 }
   0x4   :  { %9 = vsyncpa [#allocation4], 0 }
   0x5   :  { %11 = vsyncpa [#allocation4 + $0x1], 0 }
   0x6   :  { %12 = vsyncpa [#allocation7], 0 }
   0x7   :  { %14 = vsyncpa [#allocation7 + $0x1], 0 }
   0x8   :  { %15 = vsyncpa [#allocation10], 0 }
   0x9   :  { %17 = vsyncpa [#allocation10 + $0x1], 0 }
   0xa   :  { %18 = vsyncpa [#allocation5], 0 }
   0xb   :  { %20 = vsyncpa [#allocation5 + $0x1], 0  ;;  %s3588_s15 = smov 0   ;;  %s3590_s16 = smov 0  }
   0xc   :  { %s3592_s17 = smov 0   ;;  %s3594_s18 = smov 0  }
   0xd   :  { %s3596_s19 = smov 0   ;;  %s3598_s20 = smov 0  }
   0xe   :  { %s3600_s21 = smov 0   ;;  %s3602_s22 = smov 0  }
   0xf   :  { %s3604_s23 = smov 0   ;;  %s3606_s24 = smov 0  }
  0x10   :  { %s3608_s25 = smov 0   ;;  %s3610_s26 = smov 0  }
  0x11   :  { %s3612_s27 = smov 0   ;;  %s3614_s28 = smov 0  }
  0x12   :  { %s3616_s29 = smov 0   ;;  %s3618_s30 = smov 0  }
  0x13   :  { %s3620_s5 = smov 0   ;;  %s3622_s6 = smov 0  }
  0x14   :  { %s3624_s7 = smov 0  }
  0x15 LB: > { %4569 = sst [smem:[#allocation17_spill]] %s3479_s15  ;;  %s3684_s8 = sadd.s32 4294967295, %s3551_s7   ;;  %s3551_s7 = sphi %s3624_s7, %s26_s7   ;;  %s3547_s6 = sphi %s3622_s6, %s4659_s6   ;;  %s3543_s5 = sphi %s3620_s5, %s4658_s5   ;;  %s3539_s30 = sphi %s3618_s30, %s4645_s30   ;;  %s3535_s29 = sphi %s3616_s29, %s4657_s29   ;;  %s3531_s28 = sphi %s3614_s28, %s4656_s28   ;;  %s3527_s27 = sphi %s3612_s27, %s4644_s27   ;;  %s3523_s26 = sphi %s3610_s26, %s4643_s26   ;;  %s3519_s25 = sphi %s3608_s25, %s4642_s25   ;;  %s3515_s24 = sphi %s3606_s24, %s4655_s24   ;;  %s3511_s23 = sphi %s3604_s23, %s4654_s23   ;;  %s3507_s22 = sphi %s3602_s22, %s4653_s22   ;;  %s3503_s21 = sphi %s3600_s21, %s4652_s21   ;;  %s3499_s20 = sphi %s3598_s20, %s4651_s20   ;;  %s3495_s19 = sphi %s3596_s19, %s4650_s19   ;;  %s3491_s18 = sphi %s3594_s18, %s4639_s18   ;;  %s3487_s17 = sphi %s3592_s17, %s4648_s17   ;;  %s3483_s16 = sphi %s3590_s16, %s4637_s16   ;;  %s3479_s15 = sphi %s3588_s15, %s4636_s15  }
  0x16   : > { %4570 = sst [smem:[#allocation18_spill]] %s3483_s16  ;;  %s38_s10 = sadd.s32 1, %s3539_s30 }
  0x17   : > { %4571 = sst [smem:[#allocation19_spill]] %s3487_s17  ;;  %s41_s11 = sadd.s32 1, %s3543_s5 }
  0x18   : > { %4572 = sst [smem:[#allocation20_spill]] %s3491_s18  ;;  %p39_p0 = scmp.ge.s32.totalorder %s38_s10, 4 }
  0x19   : > { %4573 = sst [smem:[#allocation21_spill]] %s3495_s19  ;;  %s45_s12 = sadd.s32 1, %s3547_s6 }
  0x1a   : > { %4574 = sst [smem:[#allocation22_spill]] %s3519_s25  ;;  %s3691_s13 = ssub.s32 3, %s3539_s30 }
  0x1b   : > { %4575 = sst [smem:[#allocation23_spill]] %s3523_s26  ;;  %s4661_s10 = smov (%p39_p0, %s38_s10), 0 }
  0x1c   : > { %4576 = sst [smem:[#allocation24_spill]] %s3527_s27  ;;  %s4663_s11 = smov (!%p39_p0, %s41_s11), %s3543_s5 }
  0x1d   : > { %4577 = sst [smem:[#allocation25_spill]] %s3531_s28  ;;  %s50_s9 = ssub.s32 3, %s4661_s10 }
  0x1e   : > { %4578 = sst [smem:[#allocation26_spill]] %s3535_s29  ;;  %p65_p1 = scmp.ne.s32.totalorder %s3523_s26, %s3519_s25 }
  0x1f   : > { %4579 = sst [smem:[#allocation27_spill]] %s3539_s30  ;;  %p43_p2 = scmp.ge.s32.totalorder %s4663_s11, 2 }
  0x20   : > { %4580 = sst [smem:[#allocation28_spill]] %s4661_s10  ;;  %s3701_s4 = ssub.s32 %s3691_s13, %s50_s9 }
  0x21   : > { %p4555_p3 = scmp.eq.s32.totalorder %s3551_s7, 0  ;;  %p71_p4 = scmp.ne.s32.totalorder %s3519_s25, %s3515_s24 }
  0x22   : > { %s4665_s11 = smov (%p43_p2, %s4663_s11), 0  ;;  %s4667_s12 = smov (!%p43_p2, %s45_s12), %s3547_s6 }
  0x23   : > { %4581 = sst [smem:[#allocation29_spill]] %s4665_s11  ;;  %s54_s14 = ssub.s32 %s3543_s5, %s4665_s11 }
  0x24   : > { %p3713_p5 = por %p4555_p3, %p65_p1  ;;  %p47_p6 = scmp.ge.s32.totalorder %s4667_s12, 2 }
  0x25   : > { %p4554_p7 = scmp.eq.s32.totalorder %s3684_s8, 0  ;;  %s3721_s24 = ssub.s32 %s3539_s30, %s4661_s10 }
  0x26   : > { %s4669_s12 = smov (%p47_p6, %s4667_s12), 0  ;;  %s174_s11 = sadd.s32 1, %s3487_s17 }
  0x27   : > { %4583 = sst [smem:[#allocation30_spill]] %s4669_s12  ;;  %p3727_p9 = por %p4554_p7, %p71_p4 }
  0x28   : > { %s52_s28 = ssub.s32 %s3547_s6, %s4669_s12  ;;  %p184_p10 = scmp.ne.s32.totalorder %s3487_s17, %s3483_s16 }
  0x29   : > { %s4584_s9 = scalar_select %p3727_p9, 1, 0 }
  0x2a   : > { %s53_s27 = sor.u32 %s52_s28, %s3701_s4  ;;  %s169_s10 = sor.u32 %s3721_s24, %s52_s28 }
  0x2b   : > { %4585 = sst [smem:[#allocation31_spill]] %s4584_s9  ;;  %s55_s25 = sor.u32 %s54_s14, %s53_s27 }
  0x2c   : > { %s171_s3 = sor.u32 %s169_s10, %s54_s14  ;;  %p56_p11 = scmp.eq.s32.totalorder %s55_s25, 0 }
  0x2d   : > { %p172_p12 = scmp.eq.s32.totalorder %s171_s3, 0  ;;  %p185_p13 = scmp.eq.s32.totalorder %s3684_s8, 15 }
  0x2e   : > { %p190_p0 = scmp.ne.s32.totalorder %s3483_s16, %s3479_s15  ;;  %s4586_s9 = sadd.s32 1, %s3523_s26 }
  0x2f   : > { %s3744_s30 = scalar_select %p56_p11, %s3523_s26, %s4586_s9  }
  0x30   : > { %s3747_s12 = scalar_select %p172_p12, %s3487_s17, %s174_s11  }
  0x31   : > { %4587 = sst [smem:[#allocation32_spill]] %s3744_s30  ;;  %p3749_p1 = por %p185_p13, %p184_p10 }
  0x32   : > { %4588 = sst [smem:[#allocation33_spill]] %s3747_s12  ;;  %s4591_s19 = sadd.s32 4294967294, %s3551_s7  }
  0x33   : > { %s4589_s18 = scalar_select %p3749_p1, 1, 0 }
  0x34   : > { %p191_p2 = scmp.eq.s32.totalorder %s4591_s19, 15  ;;  %p4553_p4 = scmp.lt.s32.totalorder %s3551_s7, 16 }
  0x35   : > { %4590 = sst [smem:[#allocation34_spill]] %s4589_s18  ;;  %s3761_s3 = sand.u32 1, %s3523_s26  }
  0x36   : > { %p3756_p6 = por %p191_p2, %p190_p0  ;;  %p3767_p11 = pnand %p4553_p4, %p3713_p5 }
  0x37   : > { %s238_s28 = sand.u32 1, %s3551_s7   ;;  %s2404_s10 = sshll.u32 %s3761_s3, 4 }
  0x38   : > { %s4592_s27 = scalar_select %p3756_p6, 1, 0 }
  0x39   : > { %s2405_s19 = sshll.u32 %s3543_s5, 2  ;;  %s2406_s11 = sshll.u32 %s3547_s6, 3 }
  0x3a   : > { %4593 = sst [smem:[#allocation35_spill]] %s4592_s27  ;;  %s249_s14 = sadd.s32 %s2406_s11, %s2405_s19 }
  0x3b   : > { %s2407_s9 = sshll.u32 %s3691_s13, 4  ;;  %s242_s12 = scalar_lea.vmem [#allocation6], %s2404_s10 }
  0x3c   : > { %s251_s30 = sadd.s32 %s2407_s9, %s249_s14  ;;  %s254_s17 = sshll.u32 %s242_s12, 4  ;;  %s3776_s17 = int_to_ptr.vmem [resolvable:$true] %s254_s17 }
  0x3d   : > { %s2408_s26 = sshll.u32 %s251_s30, 6  ;;  %s4595_s1 = sld [smem:[#allocation36_spill]] }
  0x3e   : > { %s3784_s18 = scalar_lea.sflag [#allocation7], %s238_s28  ;;  %p3235_p12 = pneg %p3767_p11 }
  0x43   : > { %s3781_s15 = scalar_lea.hbm %s4595_s1, %s2408_s26  ;;  %s3238_s26 = scalar_lea.hbm %s4595_s1, 4096 }
  0x44   : > { %s3233_s19 = scalar_lea.hbm %s3781_s15, 256  ;;  %p3239_p2 = scmp.lt.u32.totalorder %s3781_s15, %s4595_s1 }
  0x45   : > { %p3234_p10 = scmp.ne.s32.totalorder %s3781_s15, %s3233_s19  ;;  %p3240_p4 = scmp.lt.u32.totalorder %s3238_s26, %s3233_s19 }
  0x46   : > { %p3242_p3 = scmp.lt.u32.totalorder %s3233_s19, %s3781_s15 }
  0x47   : > { %p3236_p13 = pnand %p3235_p12, %p3234_p10  ;;  %p3241_p7 = por %p3240_p4, %p3239_p2 }
  0x49   : > { %p3237_p0 = pneg %p3236_p13  ;;  %p3243_p8 = por %p3242_p3, %p3241_p7 }
  0x4b   : > { %p3244_p5 = pnand %p3243_p8, %p3237_p0 }
  0x4d   : > { %3247 = shalt.err (!%p3244_p5)
}
  0x4e   : > { %s3248_s28 = scalar_lea.vmem %s3776_s17, 256  ;;  %s3553_s11 = smov [#allocation6]  }
  0x4f   : > { %p3249_p10 = scmp.ne.s32.totalorder %s3776_s17, %s3248_s28  ;;  %s3253_s14 = sshll.u32 %s3553_s11, 4  ;;  %s3254_s14 = int_to_ptr.vmem [resolvable:$false] %s3253_s14 }
  0x50   : > { %s3255_s9 = scalar_lea.vmem %s3254_s14, 512  ;;  %p3256_p1 = scmp.lt.s32.totalorder %s3776_s17, %s3254_s14 }
  0x51   : > { %p3251_p13 = pnand %p3249_p10, %p3235_p12  ;;  %p3257_p4 = scmp.lt.s32.totalorder %s3255_s9, %s3248_s28 }
  0x53   : > { %p3252_p6 = pneg %p3251_p13  ;;  %p3258_p2 = por %p3257_p4, %p3256_p1 }
  0x55   : > { %p3259_p3 = pnand %p3258_p2, %p3252_p6 }
  0x57   : > { %3262 = shalt.err (!%p3259_p3)
}
  0x58   : > { %s4559_s29 = smov 64   ;;  %s4561_s19 = smov 4  }
  0x59   : > { %3033 = dma.hbm_to_vmem [thread:$0]  (!%p3767_p11), %s3781_s15, 256, %s3776_s17, %s3784_s18, %s4559_s29, %s4559_s29, %s4561_s19  }
  0x5a   : > { %p305_p7 = scmp.lt.s32.totalorder %s3551_s7, 17  ;;  %p4596_p8 = scmp.ge.s32.totalorder %s3551_s7, 1 }
  0x5b   : > { %s2398_s12 = sshll.u32 %s3761_s3, 6  ;;  %s2571_s26 = sshll.u32 %s3543_s5, 4 }
  0x5c   : > { %p3818_p1 = pnand %p4596_p8, %p305_p7  ;;  %s2401_s27 = sshll.u32 %s3547_s6, 5 }
  0x5d   : > { %s2402_s10 = sshll.u32 %s3691_s13, 6  ;;  %s223_s28 = sadd.s32 %s2571_s26, %s2401_s27 }
  0x5e   : > { %s215_s11 = scalar_lea.vmem [#allocation3], %s2398_s12  ;;  %s225_s9 = sadd.s32 %s2402_s10, %s223_s28 }
  0x5f   : > { %s228_s14 = sshll.u32 %s215_s11, 4  ;;  %s2403_s1 = sshll.u32 %s225_s9, 6  ;;  %s3826_s14 = int_to_ptr.vmem [resolvable:$true] %s228_s14 }
  0x60   : > { %s3831_s17 = scalar_lea.hbm %s4532_s0, %s2403_s1  ;;  %s212_s29 = scalar_lea.sflag [#allocation4], %s3761_s3 }
  0x61   : > { %s3263_s19 = scalar_lea.hbm %s3831_s17, 1024  ;;  %s3268_s27 = scalar_lea.hbm %s4532_s0, 16384 }
  0x62   : > { %p3264_p6 = scmp.ne.s32.totalorder %s3831_s17, %s3263_s19  ;;  %p3269_p10 = scmp.lt.u32.totalorder %s3831_s17, %s4532_s0 }
  0x63   : > { %p3270_p13 = scmp.lt.u32.totalorder %s3268_s27, %s3263_s19  ;;  %p3272_p2 = scmp.lt.u32.totalorder %s3263_s19, %s3831_s17 }
  0x64   : > { %p3266_p5 = pnand %p3264_p6, %p3235_p12 }
  0x65   : > { %p3271_p4 = por %p3270_p13, %p3269_p10 }
  0x66   : > { %p3267_p0 = pneg %p3266_p5 }
  0x67   : > { %p3273_p3 = por %p3272_p2, %p3271_p4 }
  0x69   : > { %p3274_p7 = pnand %p3273_p3, %p3267_p0 }
  0x6b   : > { %3277 = shalt.err (!%p3274_p7)
}
  0x6c   : > { %s3278_s1 = scalar_lea.vmem %s3826_s14, 1024  ;;  %s3556_s16 = smov [#allocation3]  }
  0x6d   : > { %p3279_p8 = scmp.ne.s32.totalorder %s3826_s14, %s3278_s1  ;;  %s3283_s11 = sshll.u32 %s3556_s16, 4  ;;  %s3284_s11 = int_to_ptr.vmem [resolvable:$false] %s3283_s11 }
  0x6e   : > { %s3285_s9 = scalar_lea.vmem %s3284_s11, 2048  ;;  %p3286_p9 = scmp.lt.s32.totalorder %s3826_s14, %s3284_s11 }
  0x6f   : > { %p3281_p6 = pnand %p3279_p8, %p3235_p12  ;;  %p3287_p10 = scmp.lt.s32.totalorder %s3285_s9, %s3278_s1 }
  0x71   : > { %p3282_p5 = pneg %p3281_p6  ;;  %p3288_p13 = por %p3287_p10, %p3286_p9 }
  0x73   : > { %p3289_p4 = pnand %p3288_p13, %p3282_p5 }
  0x75   : > { %3292 = shalt.err (!%p3289_p4)
}
  0x76   : > { %s4598_s19 = smov 4   ;;  %s4599_s15 = smov 64  }
  0x77   : > { %3030 = dma.hbm_to_vmem [thread:$0]  (!%p3767_p11), %s3831_s17, 1024, %s3826_s14, %s212_s29, %s4599_s15, %s4599_s15, %s4598_s19  }
  0x78   : > { %s118_s25 = sadd.s32 1, %s3511_s23  ;;  %p125_p9 = scmp.ne.s32.totalorder %s3511_s23, %s3507_s22 }
  0x79   : > { %p4600_p12 = scmp.eq.s32.totalorder %s3701_s4, 0  ;;  %p4601_p0 = scmp.eq.s32.totalorder %s3551_s7, 0 }
  0x7a   : > { %p131_p3 = scmp.ne.s32.totalorder %s3507_s22, %s3503_s21  ;;  %s266_s3 = sand.u32 1, %s3511_s23  }
  0x7b   : > { %s3868_s12 = scalar_select %p4600_p12, %s3511_s23, %s118_s25  }
  0x7c   : > { %p127_p2 = por %p125_p9, %p4601_p0  ;;  %s2572_s26 = sshll.u32 %s3691_s13, 8 }
  0x7d   : > { %p4602_p7 = scmp.eq.s32.totalorder %s3684_s8, 0  ;;  %s2409_s10 = sshll.u32 %s266_s3, 4 }
  0x7e   : > { %s3885_s29 = scalar_lea.hbm %s4534_s2, %s2572_s26  ;;  %s268_s4 = scalar_lea.vmem [#allocation8], %s2409_s10 }
  0x7f   : > { %p3878_p8 = por %p131_p3, %p4602_p7  ;;  %s276_s14 = sshll.u32 %s268_s4, 4  ;;  %s3893_s14 = int_to_ptr.vmem [resolvable:$true] %s276_s14 }
  0x80   : > { %p4604_p11 = scmp.lt.s32.totalorder %s3551_s7, 16  ;;  %s3293_s13 = scalar_lea.hbm %s3885_s29, 256 }
  0x81   : > { %s4603_s27 = scalar_select %p3878_p8, 1, 0 }
  0x82   : > { %p3889_p6 = pnand %p4604_p11, %p127_p2  ;;  %p3294_p5 = scmp.ne.s32.totalorder %s3885_s29, %s3293_s13 }
  0x83   : > { %s3298_s11 = scalar_lea.hbm %s4534_s2, 1024  ;;  %p3299_p9 = scmp.lt.u32.totalorder %s3885_s29, %s4534_s2 }
  0x84   : > { %p3295_p10 = pneg %p3889_p6  ;;  %p3300_p12 = scmp.lt.u32.totalorder %s3298_s11, %s3293_s13 }
  0x85   : > { %p3302_p2 = scmp.lt.u32.totalorder %s3293_s13, %s3885_s29 }
  0x86   : > { %p3296_p13 = pnand %p3295_p10, %p3294_p5  ;;  %p3301_p0 = por %p3300_p12, %p3299_p9 }
  0x88   : > { %p3297_p4 = pneg %p3296_p13  ;;  %p3303_p3 = por %p3302_p2, %p3301_p0 }
  0x8a   : > { %p3304_p7 = pnand %p3303_p3, %p3297_p4 }
  0x8c   : > { %3307 = shalt.err (!%p3304_p7)
}
  0x8d   : > { %s3308_s3 = scalar_lea.vmem %s3893_s14, 256  ;;  %s3557_s26 = smov [#allocation8]  }
  0x8e   : > { %p3309_p11 = scmp.ne.s32.totalorder %s3893_s14, %s3308_s3  ;;  %s3313_s10 = sshll.u32 %s3557_s26, 4  ;;  %s3314_s10 = int_to_ptr.vmem [resolvable:$false] %s3313_s10 }
  0x8f   : > { %s3315_s28 = scalar_lea.vmem %s3314_s10, 512  ;;  %p3316_p8 = scmp.lt.s32.totalorder %s3893_s14, %s3314_s10 }
  0x90   : > { %p3311_p5 = pnand %p3309_p11, %p3295_p10  ;;  %p3317_p9 = scmp.lt.s32.totalorder %s3315_s28, %s3308_s3 }
  0x92   : > { %p3312_p13 = pneg %p3311_p5  ;;  %p3318_p12 = por %p3317_p9, %p3316_p8 }
  0x94   : > { %p3319_p0 = pnand %p3318_p12, %p3312_p13 }
  0x96   : > { %3322 = shalt.err (!%p3319_p0)
}
  0x97   : > { %s4606_s1 = sld [smem:[#allocation21_spill]]  ;;  %s4607_s4 = sld [smem:[#allocation20_spill]] }
  0x98   : > { %s4608_s13 = sld [smem:[#allocation27_spill]]  ;;  %p142_p8 = scmp.eq.s32.totalorder %s3721_s24, 0 }
  0x99   : > { %3036 = dma.hbm_to_vmem [thread:$0]  (!%p3889_p6), %s3885_s29, 256, %s3893_s14, %s3784_s18, %s4599_s15, %s4599_s15, %s4598_s19  }
  0x9a   : > { %s144_s21 = sadd.s32 1, %s3499_s20  ;;  %p4609_p2 = scmp.eq.s32.totalorder %s3551_s7, 0 }
  0x9b   : > { %s3931_s17 = scalar_select %p142_p8, %s3499_s20, %s144_s21  }
  0x9c   : > { %p4610_p7 = scmp.eq.s32.totalorder %s3684_s8, 0  ;;  %s286_s11 = sand.u32 1, %s3499_s20  }
  0x9d   : > { %p151_p10 = scmp.ne.s32.totalorder %s3499_s20, %s4606_s1  ;;  %p157_p4 = scmp.ne.s32.totalorder %s4606_s1, %s4607_s4 }
  0x9e   : > { %s3015_s9 = smul.u32 2304, %s4608_s13  ;;  %p4612_p5 = scmp.lt.s32.totalorder %s3551_s7, 16 }
  0x9f   : > { %p153_p3 = por %p151_p10, %p4609_p2  ;;  %p3937_p11 = por %p157_p4, %p4610_p7 }
  0xa0   : > { %s3014_s25 = smul.u32 144, %s286_s11  ;;  %s4614_s29 = sld [smem:[#allocation37_spill]] }
  0xa1   : > { %s4611_s16 = scalar_select %p3937_p11, 1, 0 }
  0xa2   : > { %p3945_p13 = pnand %p4612_p5, %p153_p3  ;;  %s290_s10 = scalar_lea.vmem [#allocation9], %s3014_s25 }
  0xa3   : > { %s297_s28 = sshll.u32 %s290_s10, 4  ;;  %s3956_s1 = scalar_lea.sflag [#allocation10], %s286_s11  ;;  %s3954_s28 = int_to_ptr.vmem [resolvable:$true] %s297_s28 }
  0xa4   : > { %p3325_p9 = pneg %p3945_p13 }
  0xa6   : > { %s4615_s14 = smov %s4614_s29  ;;  %s3952_s26 = scalar_lea.hbm %s4614_s29, %s3015_s9 }
  0xa7   : > { %s3323_s4 = scalar_lea.hbm %s3952_s26, 2304  ;;  %s3328_s9 = scalar_lea.hbm %s4615_s14, 9216 }
  0xa8   : > { %p3324_p6 = scmp.ne.s32.totalorder %s3952_s26, %s3323_s4  ;;  %p3329_p8 = scmp.lt.u32.totalorder %s3952_s26, %s4615_s14 }
  0xa9   : > { %p3330_p10 = scmp.lt.u32.totalorder %s3328_s9, %s3323_s4  ;;  %p3332_p2 = scmp.lt.u32.totalorder %s3323_s4, %s3952_s26 }
  0xaa   : > { %p3326_p12 = pnand %p3325_p9, %p3324_p6 }
  0xab   : > { %p3331_p4 = por %p3330_p10, %p3329_p8 }
  0xac   : > { %p3327_p0 = pneg %p3326_p12 }
  0xad   : > { %p3333_p3 = por %p3332_p2, %p3331_p4 }
  0xaf   : > { %p3334_p7 = pnand %p3333_p3, %p3327_p0 }
  0xb1   : > { %3337 = shalt.err (!%p3334_p7)
}
  0xb2   : > { %s3338_s11 = scalar_lea.vmem %s3954_s28, 2304  ;;  %s3558_s25 = smov [#allocation9]  }
  0xb3   : > { %p3339_p5 = scmp.ne.s32.totalorder %s3954_s28, %s3338_s11  ;;  %s3343_s29 = sshll.u32 %s3558_s25, 4  ;;  %s3344_s29 = int_to_ptr.vmem [resolvable:$false] %s3343_s29 }
  0xb4   : > { %s3345_s10 = scalar_lea.vmem %s3344_s29, 4608  ;;  %p3346_p11 = scmp.lt.s32.totalorder %s3954_s28, %s3344_s29 }
  0xb5   : > { %p3341_p6 = pnand %p3339_p5, %p3325_p9  ;;  %p3347_p8 = scmp.lt.s32.totalorder %s3345_s10, %s3338_s11 }
  0xb7   : > { %p3342_p12 = pneg %p3341_p6  ;;  %p3348_p10 = por %p3347_p8, %p3346_p11 }
  0xb9   : > { %p3349_p4 = pnand %p3348_p10, %p3342_p12 }
  0xbb   : > { %3352 = shalt.err (!%p3349_p4)
}
  0xbc   : > { %3039 = dma.hbm_to_vmem [thread:$0]  (!%p3945_p13), %s3952_s26, 2304, %s3954_s28, %s3956_s1, %s4599_s15, %s4599_s15, %s4598_s19  }
  0xbd   : > { %309 = sbr.rel (%p3818_p1) target bundleno = 870 (0x366), region = 36  ;;  %s4616_s4 = sld [smem:[#allocation22_spill]] (!%p3818_p1) }
  0xbe   : > { %s4617_s13 = sld [smem:[#allocation31_spill]] (!%p3818_p1) }
  0xc3   : > { %s311_s21 = sand.u32 (!%p3818_p1), 1, %s4616_s4  }
  0xc4   : > { %s2414_s9 = sshll.u32 %s311_s21, 6  ;;  %s312_s18 = scalar_lea.sflag [#allocation4], %s311_s21 }
  0xc5   : > { %s3990_s24 = scalar_lea.vmem [#allocation3], %s2414_s9  ;;  %p4618_p11 = scmp.ne.s32.totalorder %s4617_s13, 0 }
  0xc7   : > { %3458 = dma.done.wait (%p4618_p11), %s312_s18, 1024  }
  0xc8   : > { %3460 = vsyncadd (%p4618_p11), %s312_s18, 4294966272  ;;  %s320_s3 = sand.u32 1, %s3684_s8   ;;  %s2415_s11 = sshll.u32 %s311_s21, 4 }
  0xc9   : > { %s321_s19 = scalar_lea.sflag [#allocation7], %s320_s3  ;;  %s3997_s15 = scalar_lea.vmem [#allocation6], %s2415_s11 }
  0xca   : > { %3462 = dma.done.wait (%p4618_p11), %s321_s19, 256  }
  0xcb   : > { %3464 = vsyncadd (%p4618_p11), %s321_s19, 4294967040  ;;  %s331_s30 = sand.u32 1, %s3507_s22   ;;  %p4619_p1 = scmp.ne.s32.totalorder %s4603_s27, 0 }
  0xcc   : > { %s4004_s26 = sshll.u32 %s331_s30, 4 }
  0xcd   : > { %s333_s28 = scalar_lea.vmem [#allocation8], %s4004_s26 }
  0xce   : > { %3466 = dma.done.wait (%p4619_p1), %s321_s19, 256  }
  0xcf   : > { %3468 = vsyncadd (%p4619_p1), %s321_s19, 4294967040  ;;  %s4620_s8 = sld [smem:[#allocation21_spill]]  ;;  %p4621_p13 = scmp.ne.s32.totalorder %s4611_s16, 0 }
  0xd5   : > { %s338_s1 = sand.u32 1, %s4620_s8  }
  0xd6   : > { %s3016_s25 = smul.u32 144, %s338_s1  ;;  %s339_s29 = scalar_lea.sflag [#allocation10], %s338_s1 }
  0xd8   : > { %s4012_s10 = scalar_lea.vmem [#allocation9], %s3016_s25 }
  0xd9   : > { %3470 = dma.done.wait (%p4621_p13), %s339_s29, 2304  }
  0xda   : > { %3472 = vsyncadd (%p4621_p13), %s339_s29, 4294964992  ;;  %s4622_s4 = sld [smem:[#allocation18_spill]]  ;;  %s4623_s27 = sld [smem:[#allocation24_spill]] }
  0xe0   : > { %s379_s13 = sand.u32 1, %s4622_s4   ;;  %p2418_p9 = scmp.ne.s32.totalorder %s4623_s27, 0 }
  0xe1   : > { %s2417_s21 = sshll.u32 %s379_s13, 7  ;;  %vm392_vm0 = vcmask (!%p2418_p9), 261120   ;;  %vm395_vm1 = vcmask (!%p2418_p9), 254976   ;;  %v3559_v0 = vmov (!%p2418_p9), 0.0  }
  0xe2   : > { %s4021_s9 = scalar_lea.vmem [#allocation11], %s2417_s21  ;;  %391 = sbr.rel (%p2418_p9) target bundleno = 241 (0xf1), region = 56  ;;  %393 = vst.msk [vmem:[#allocation2] sm:$0xff] (!%p2418_p9), %vm392_vm0, %v3559_v0  ;;  %394 = vst.msk [vmem:[#allocation2 + $0x8] sm:$0xff] (!%p2418_p9), %vm392_vm0, %v3559_v0 }
  0xe3   : > { %397 = vst.msk [vmem:[#allocation2 + $0x18] sm:$0xff] (!%p2418_p9), %vm392_vm0, %v3559_v0  ;;  %398 = vst.msk [vmem:[#allocation2 + $0x20] sm:$0xff] (!%p2418_p9), %vm392_vm0, %v3559_v0 }
  0xe4   : > { %400 = vst.msk [vmem:[#allocation2 + $0x30] sm:$0xff] (!%p2418_p9), %vm392_vm0, %v3559_v0  ;;  %401 = vst.msk [vmem:[#allocation2 + $0x38] sm:$0xff] (!%p2418_p9), %vm392_vm0, %v3559_v0 }
  0xe5   : > { %403 = vst.msk [vmem:[#allocation2 + $0x48] sm:$0xff] (!%p2418_p9), %vm392_vm0, %v3559_v0  ;;  %404 = vst.msk [vmem:[#allocation2 + $0x50] sm:$0xff] (!%p2418_p9), %vm392_vm0, %v3559_v0 }
  0xe6   : > { %406 = vst.msk [vmem:[#allocation2 + $0x60] sm:$0xff] (!%p2418_p9), %vm392_vm0, %v3559_v0  ;;  %407 = vst.msk [vmem:[#allocation2 + $0x68] sm:$0xff] (!%p2418_p9), %vm392_vm0, %v3559_v0 }
  0xe7   : > { %409 = vst.msk [vmem:[#allocation2 + $0x78] sm:$0xff] (!%p2418_p9), %vm392_vm0, %v3559_v0  ;;  %410 = vst.msk [vmem:[#allocation2 + $0x80] sm:$0xff] (!%p2418_p9), %vm392_vm0, %v3559_v0 }
  0xe8   : > { %412 = vst.msk [vmem:[#allocation2 + $0x90] sm:$0xff] (!%p2418_p9), %vm392_vm0, %v3559_v0  ;;  %413 = vst.msk [vmem:[#allocation2 + $0x98] sm:$0xff] (!%p2418_p9), %vm392_vm0, %v3559_v0 }
  0xe9   : > { %415 = vst.msk [vmem:[#allocation2 + $0xa8] sm:$0xff] %vm392_vm0, %v3559_v0  ;;  %416 = vst.msk [vmem:[#allocation2 + $0xb0] sm:$0xff] %vm392_vm0, %v3559_v0 }
  0xea   : > { %418 = vst.msk [vmem:[#allocation2 + $0xc0] sm:$0xff] %vm392_vm0, %v3559_v0  ;;  %419 = vst.msk [vmem:[#allocation2 + $0xc8] sm:$0xff] %vm392_vm0, %v3559_v0 }
  0xeb   : > { %421 = vst.msk [vmem:[#allocation2 + $0xd8] sm:$0xff] %vm392_vm0, %v3559_v0  ;;  %422 = vst.msk [vmem:[#allocation2 + $0xe0] sm:$0xff] %vm392_vm0, %v3559_v0 }
  0xec   : > { %396 = vst.msk [vmem:[#allocation2 + $0x10] sm:$0x3] %vm395_vm1, %v3559_v0  ;;  %399 = vst.msk [vmem:[#allocation2 + $0x28] sm:$0x3] %vm395_vm1, %v3559_v0 }
  0xed   : > { %402 = vst.msk [vmem:[#allocation2 + $0x40] sm:$0x3] %vm395_vm1, %v3559_v0  ;;  %405 = vst.msk [vmem:[#allocation2 + $0x58] sm:$0x3] %vm395_vm1, %v3559_v0 }
  0xee   : > { %408 = vst.msk [vmem:[#allocation2 + $0x70] sm:$0x3] %vm395_vm1, %v3559_v0  ;;  %411 = vst.msk [vmem:[#allocation2 + $0x88] sm:$0x3] %vm395_vm1, %v3559_v0 }
  0xef   : > { %414 = vst.msk [vmem:[#allocation2 + $0xa0] sm:$0x3] %vm395_vm1, %v3559_v0  ;;  %417 = vst.msk [vmem:[#allocation2 + $0xb8] sm:$0x3] %vm395_vm1, %v3559_v0 }
  0xf0   : > { %420 = vst.msk [vmem:[#allocation2 + $0xd0] sm:$0x3] %vm395_vm1, %v3559_v0  ;;  %423 = vst.msk [vmem:[#allocation2 + $0xe8] sm:$0x3] %vm395_vm1, %v3559_v0 }
  0xf1 PF: > { %v3203_v1 = vld [vmem:[%s333_s28] sm:$0xff]   ;;  %v3204_v2 = vld [vmem:[%s333_s28 + $0x8] sm:$0xff]   ;;  %vm496_vm2 = vcmask 261120   ;;  %v3216_v14 = vld [vmem:[%s4012_s10 + $0x10] sm:$0xff]   ;;  %vm803_vm3 = vsmask.f32 7424 }
  0xf2   : > { %2678 = vmatprep.subr.bf16.mxu0 %v3203_v1  ;;  %2698 = vmatprep.subr.bf16.mxu1 %v3203_v1  ;;  %v3205_v3 = vld [vmem:[%s3990_s24] sm:$0xff]   ;;  %v3207_v5 = vld [vmem:[%s3990_s24 + $0x8] sm:$0xff]   ;;  %v3209_v7 = vld [vmem:[%s3990_s24 + $0x10] sm:$0xff]   ;;  %vm1179_vm4 = vcmask 1046528   ;;  %s4624_s16 = sld [smem:[#allocation25_spill]]  ;;  %s4625_s18 = sld [smem:[#allocation26_spill]] }
  0xf3   : > { %2679 = vmatpush3.bf16.msra.mxu0 %v3203_v1  ;;  %2699 = vmatpush3.bf16.msra.mxu1 %v3203_v1  ;;  %v3206_v4 = vld [vmem:[%s3997_s15] sm:$0xff]   ;;  %v3208_v6 = vld [vmem:[%s3997_s15 + $0x8] sm:$0xff]   ;;  %v3218_v16 = vld [vmem:[%s4012_s10 + $0x18] sm:$0xff]   ;;  %s2223_s28 = sshll.u32 %s4021_s9, 4  ;;  %s4628_s8 = sld [smem:[#allocation34_spill]]  ;;  %s4426_s28 = int_to_ptr.vmem [resolvable:$true] %s2223_s28 }
  0xf4   : > { %2680 = vmatprep.subr.bf16.mxu0 %v3204_v2  ;;  %2700 = vmatprep.subr.bf16.mxu1 %v3204_v2  ;;  %v3210_v8 = vld [vmem:[%s3990_s24 + $0x18] sm:$0xff]   ;;  %v3211_v9 = vld [vmem:[%s3990_s24 + $0x20] sm:$0xff]   ;;  %v3212_v10 = vld [vmem:[%s3990_s24 + $0x28] sm:$0xff]   ;;  %s4441_s21 = scalar_lea.sflag [#allocation5], %s379_s13  ;;  %s3353_s27 = scalar_lea.vmem %s4426_s28, 2048 }
  0xf5   : > { %2682 = vmatprep.mubr.msk.bf16.mxu0 %vm496_vm2, %v3205_v3  ;;  %2702 = vmatprep.mubr.msk.bf16.mxu1 %vm496_vm2, %v3206_v4  ;;  %v3213_v11 = vld [vmem:[%s3990_s24 + $0x30] sm:$0xff]   ;;  %v3214_v12 = vld [vmem:[%s3990_s24 + $0x38] sm:$0xff]   ;;  %v621_v19 = vld [vmem:[#allocation2 + $0x31] sm:$0xff]  ;;  %s4626_s24 = sld [smem:[#allocation24_spill]]  ;;  %p3354_p0 = scmp.ne.s32.totalorder %s4426_s28, %s3353_s27 }
  0xf6   : > { %v3215_v13 = vld [vmem:[%s4012_s10 + $0x40] sm:$0xff]   ;;  %v3217_v15 = vld [vmem:[%s4012_s10 + $0x48] sm:$0xff]   ;;  %v4083_v17 = vld [vmem:[%s4012_s10 + $0x50] sm:$0xff]  }
  0xf7   : > { %2681 = vmatpush3.bf16.msra.mxu0 %v3204_v2  ;;  %2701 = vmatpush3.bf16.msra.mxu1 %v3204_v2  ;;  %v4087_v18 = vld [vmem:[%s4012_s10] sm:$0xff]  }
  0xf8   : > { %2786 = vmatprep.subr.bf16.mxu1 %v3215_v13  ;;  %2706 = vmatprep.subr.bf16.mxu0 %v3216_v14  ;;  %v743_v20 = vld [vmem:[#allocation2 + $0xd9] sm:$0xff]  ;;  %v736_v22 = vld [vmem:[#allocation2 + $0x1] sm:$0xff]  ;;  %v737_v32 = vld [vmem:[#allocation2 + $0x9] sm:$0xff]  ;;  %s2573_s3 = sshll.u32 %s4624_s16, 4  ;;  %s2566_s11 = sshll.u32 %s4625_s18, 5 }
  0xf9   : > { %v619_v21 = vld [vmem:[#allocation2 + $0x19] sm:$0xff]  ;;  %v744_v26 = vld [vmem:[#allocation2 + $0xe1] sm:$0xff]  ;;  %v623_v44 = vld [vmem:[#allocation2 + $0x49] sm:$0xff]  ;;  %s2218_s19 = sadd.s32 %s2573_s3, %s2566_s11  ;;  %p4630_p2 = scmp.ne.s32.totalorder %s4628_s8, 0 }
  0xfa   : > { %2683 = vmatmul.mubr.msk.bf16.vlgmr.msra.gmra.mrb[0].mxu0 %vm496_vm2, %v3207_v5  ;;  %2703 = vmatmul.mubr.msk.bf16.vlgmr.msra.gmra.mrb[0].mxu1 %vm496_vm2, %v3208_v6  ;;  %v622_v25 = vld [vmem:[#allocation2 + $0x39] sm:$0xff]  ;;  %v620_v31 = vld [vmem:[#allocation2 + $0x21] sm:$0xff]  ;;  %v626_v46 = vld [vmem:[#allocation2 + $0x69] sm:$0xff]  ;;  %s3560_s16 = smov [#allocation11]  }
  0xfb   : > { %2686 = vmatprep.mubr.msk.bf16.mxu0 %vm496_vm2, %v3209_v7  ;;  %2787 = vmatpush3.bf16.msra.mxu1 %v3215_v13  ;;  %v625_v43 = vld [vmem:[#allocation2 + $0x61] sm:$0xff]  ;;  %v624_v49 = vld [vmem:[#allocation2 + $0x51] sm:$0xff]  ;;  %v627_v6 = vld [vmem:[#allocation2 + $0x79] sm:$0xff]  ;;  %s2567_s15 = sshll.u32 %s4626_s24, 6  ;;  %p3355_p3 = pnand %p3354_p0, %p4630_p2 }
  0xfc   : > { %2707 = vmatpush3.bf16.msra.mxu0 %v3216_v14  ;;  %2788 = vmatprep.subr.bf16.mxu1 %v3217_v15  ;;  %v629_v1 = vld [vmem:[#allocation2 + $0x91] sm:$0xff]  ;;  %s2220_s30 = sadd.s32 %s2567_s15, %s2218_s19  ;;  %s3357_s18 = sshll.u32 %s3560_s16, 4  ;;  %s3358_s18 = int_to_ptr.vmem [resolvable:$false] %s3357_s18 }
  0xfd   : > { %2708 = vmatprep.subr.bf16.mxu0 %v3218_v16  ;;  %s2568_s1 = sshll.u32 %s2220_s30, 7  ;;  %p3356_p7 = pneg %p3355_p3 }
  0xfe   : > { %s3359_s24 = scalar_lea.vmem %s3358_s18, 4096  ;;  %p3360_p5 = scmp.lt.s32.totalorder %s4426_s28, %s3358_s18 }
  0xff   : > { %2789 = vmatpush3.bf16.msra.mxu1 %v3217_v15  ;;  %p3361_p6 = scmp.lt.s32.totalorder %s3359_s24, %s3353_s27 }
 0x100   : > { %2709 = vmatpush3.bf16.msra.mxu0 %v3218_v16  ;;  %2806 = vmatprep.subr.bf16.mxu1 %v4083_v17 }
 0x101   : > { %2726 = vmatprep.subr.bf16.mxu0 %v4087_v18  ;;  %p3362_p12 = por %p3361_p6, %p3360_p5 }
 0x102   : > { %2687 = vmatmul.mubr.msk.bf16.gmra.mrb[4].mxu0 %vm496_vm2, %v3210_v8 }
 0x103   : > { %2690 = vmatprep.mubr.msk.bf16.mxu0 %vm496_vm2, %v3211_v9  ;;  %p3363_p8 = pnand %p3362_p12, %p3356_p7 }
 0x10a   : > { %2691 = vmatmul.mubr.msk.bf16.gmra.mrb[8].mxu0 %vm496_vm2, %v3212_v10  ;;  %v630_v10 = vld [vmem:[#allocation2 + $0x99] sm:$0xff] }
 0x10b   : > { %2694 = vmatprep.mubr.msk.bf16.mxu0 %vm496_vm2, %v3213_v11 }
 0x112   : > { %2695 = vmatmul.mubr.msk.bf16.gmra.mrb[12].mxu0 %vm496_vm2, %v3214_v12 }
 0x1cd   : > { %v2684_v23 = vpop.f32.mrb[0].mxu0  ;;  %v2704_v24 = vpop.f32.mrb[0].mxu1 }
 0x1ce   : > { %v637_v27 = vadd.f32 %v2684_v23, %v621_v19  ;;  %v745_v28 = vadd.f32 %v2704_v24, %v743_v20  ;;  %v555_v29 = vpop.f32.mrb[1].mxu0  ;;  %v721_v30 = vpop.f32.mrb[1].mxu1  ;;  %v628_v19 = vld [vmem:[#allocation2 + $0x81] sm:$0xff] }
 0x1cf   : > { %v635_v33 = vadd.f32 %v619_v21, %v555_v29  ;;  %v738_v34 = vadd.f32 %v736_v22, %v721_v30  ;;  %v2685_v35 = vpop.f32.mrb[2].mxu0  ;;  %v2705_v36 = vpop.f32.mrb[2].mxu1 }
 0x1d0   : > { %653 = vst.msk [vmem:[#allocation2 + $0x31] sm:$0xff] %vm496_vm2, %v637_v27  ;;  %747 = vst.msk [vmem:[#allocation2 + $0xd9] sm:$0xff] %vm496_vm2, %v745_v28  ;;  %v638_v37 = vadd.f32 %v2685_v35, %v622_v25  ;;  %v746_v38 = vadd.f32 %v2705_v36, %v744_v26  ;;  %v558_v39 = vpop.f32.mrb[3].mxu0  ;;  %v724_v40 = vpop.f32.mrb[3].mxu1 }
 0x1d1   : > { %651 = vst.msk [vmem:[#allocation2 + $0x19] sm:$0xff] %vm496_vm2, %v635_v33  ;;  %740 = vst.msk [vmem:[#allocation2 + $0x1] sm:$0xff] %vm496_vm2, %v738_v34  ;;  %v636_v41 = vadd.f32 %v620_v31, %v558_v39  ;;  %v739_v42 = vadd.f32 %v737_v32, %v724_v40 }
 0x1d2   : > { %654 = vst.msk [vmem:[#allocation2 + $0x39] sm:$0xff] %vm496_vm2, %v638_v37  ;;  %748 = vst.msk [vmem:[#allocation2 + $0xe1] sm:$0xff] %vm496_vm2, %v746_v38 }
 0x1d3   : > { %652 = vst.msk [vmem:[#allocation2 + $0x21] sm:$0xff] %vm496_vm2, %v636_v41  ;;  %741 = vst.msk [vmem:[#allocation2 + $0x9] sm:$0xff] %vm496_vm2, %v739_v42 }
 0x1d5   : > { %v2688_v45 = vpop.f32.mrb[4].mxu0 }
 0x1d6   : > { %v641_v47 = vadd.f32 %v2688_v45, %v625_v43  ;;  %v571_v48 = vpop.f32.mrb[5].mxu0 }
 0x1d7   : > { %v639_v50 = vadd.f32 %v623_v44, %v571_v48  ;;  %v2689_v51 = vpop.f32.mrb[6].mxu0  ;;  %v755_v55 = vld [vmem:[#allocation2 + $0x30] sm:$0xff] }
 0x1d8   : > { %657 = vst.msk [vmem:[#allocation2 + $0x61] sm:$0xff] %vm496_vm2, %v641_v47  ;;  %v642_v52 = vadd.f32 %v2689_v51, %v626_v46  ;;  %v574_v53 = vpop.f32.mrb[7].mxu0  ;;  %v749_v54 = vld [vmem:[#allocation2] sm:$0xff]  ;;  %v752_v57 = vld [vmem:[#allocation2 + $0x18] sm:$0xff]  ;;  %v631_v51 = vld [vmem:[#allocation2 + $0xa9] sm:$0xff] }
 0x1d9   : > { %655 = vst.msk [vmem:[#allocation2 + $0x49] sm:$0xff] %vm496_vm2, %v639_v50  ;;  %v640_v56 = vadd.f32 %v624_v49, %v574_v53  ;;  %v756_v58 = vld [vmem:[#allocation2 + $0x38] sm:$0xff]  ;;  %v757_v59 = vld [vmem:[#allocation2 + $0x40] sm:$0x3] }
 0x1da   : > { %658 = vst.msk [vmem:[#allocation2 + $0x69] sm:$0xff] %vm496_vm2, %v642_v52  ;;  %v750_v60 = vld [vmem:[#allocation2 + $0x8] sm:$0xff]  ;;  %v751_v61 = vld [vmem:[#allocation2 + $0x10] sm:$0x3]  ;;  %v753_v62 = vld [vmem:[#allocation2 + $0x20] sm:$0xff]  ;;  %v4101_v63 = vpack.c.bf16 %v756_v58, %v755_v55  ;;  %v4103_v0 = vpack.c.bf16 %v757_v59, %v757_v59 }
 0x1db   : > { %656 = vst.msk [vmem:[#allocation2 + $0x51] sm:$0xff] %vm496_vm2, %v640_v56  ;;  %v4106_v2 = vpack.c.bf16 %v750_v60, %v749_v54  ;;  %v4108_v3 = vpack.c.bf16 %v751_v61, %v751_v61  ;;  %v754_v4 = vld [vmem:[#allocation2 + $0x28] sm:$0x3]  ;;  %v4110_v5 = vpack.c.bf16 %v753_v62, %v752_v57  ;;  %v632_v62 = vld [vmem:[#allocation2 + $0xb1] sm:$0xff] }
 0x1dc   : > { %v4112_v7 = vpack.c.bf16 %v754_v4, %v754_v4  ;;  %v831_v8 = vshll.u32 %v4101_v63, 16  ;;  %v836_v14 = vshll.u32 %v4103_v0, 16  ;;  %v829_v27 = vshrl.u32 %v4101_v63, 16  ;;  %v633_v46 = vld [vmem:[#allocation2 + $0xc1] sm:$0xff]  ;;  %v634_v57 = vld [vmem:[#allocation2 + $0xc9] sm:$0xff] }
 0x1dd   : > { %v2692_v9 = vpop.f32.mrb[8].mxu0  ;;  %v805_v11 = vshrl.u32 %v4106_v2, 16  ;;  %v807_v12 = vshll.u32 %v4106_v2, 16  ;;  %v812_v13 = vshll.u32 %v4108_v3, 16  ;;  %v819_v20 = vshll.u32 %v4110_v5, 16  ;;  %v3220_v53 = vld [vmem:[%s4012_s10 + $0x58] sm:$0xff]  }
 0x1de   : > { %v645_v15 = vadd.f32 %v2692_v9, %v629_v1  ;;  %v587_v16 = vpop.f32.mrb[9].mxu0  ;;  %v824_v21 = vshll.u32 %v4112_v7, 16  ;;  %v833_v22 = vrot.slane %v831_v8, 1  ;;  %v817_v30 = vshrl.u32 %v4110_v5, 16  ;;  %v3222_v54 = vld [vmem:[%s4012_s10 + $0x8] sm:$0xff]  }
 0x1df   : > { %v643_v23 = vadd.f32 %v627_v6, %v587_v16  ;;  %v2693_v24 = vpop.f32.mrb[10].mxu0  ;;  %v809_v25 = vrot.slane %v807_v12, 1  ;;  %v814_v26 = vrot.slane %v812_v13, 1  ;;  %v821_v31 = vrot.slane %v819_v20, 1  ;;  %v761_v35 = vld [vmem:[#allocation2 + $0x60] sm:$0xff] }
 0x1e0   : > { %661 = vst.msk [vmem:[#allocation2 + $0x91] sm:$0xff] %vm496_vm2, %v645_v15  ;;  %v646_v28 = vadd.f32 %v2693_v24, %v630_v10  ;;  %v590_v29 = vpop.f32.mrb[11].mxu0  ;;  %v834_v34 = vor.u32 %v833_v22, %v829_v27  ;;  %v826_v39 = vrot.slane %v824_v21, 1  ;;  %v838_v40 = vrot.slane %v836_v14, 1  ;;  %v758_v41 = vld [vmem:[#allocation2 + $0x48] sm:$0xff]  ;;  %v4159_v14 = vld [vmem:[%s4012_s10 + $0x60] sm:$0xff]  }
 0x1e1   : > { %659 = vst.msk [vmem:[#allocation2 + $0x79] sm:$0xff] %vm496_vm2, %v643_v23  ;;  %v644_v32 = vadd.f32 %v628_v19, %v590_v29  ;;  %v810_v33 = vor.u32 %v809_v25, %v805_v11  ;;  %v762_v36 = vld [vmem:[#allocation2 + $0x68] sm:$0xff]  ;;  %v763_v37 = vld [vmem:[#allocation2 + $0x70] sm:$0x3]  ;;  %v822_v38 = vor.u32 %v821_v31, %v817_v30 }
 0x1e2   : > { %662 = vst.msk [vmem:[#allocation2 + $0x99] sm:$0xff] %vm496_vm2, %v646_v28  ;;  %v759_v42 = vld [vmem:[#allocation2 + $0x50] sm:$0xff]  ;;  %v760_v43 = vld [vmem:[#allocation2 + $0x58] sm:$0x3]  ;;  %v4126_v44 = vpack.c.bf16 %v762_v36, %v761_v35  ;;  %v4134_v49 = vpack.c.bf16 %v763_v37, %v763_v37  ;;  %v4144_v56 = vsel %vm803_vm3, %v834_v34, %v838_v40 }
 0x1e3   : > { %660 = vst.msk [vmem:[#allocation2 + $0x81] sm:$0xff] %vm496_vm2, %v644_v32  ;;  %v815_v45 = vsel %vm803_vm3, %v810_v33, %v814_v26  ;;  %v4130_v47 = vpack.c.bf16 %v759_v42, %v758_v41  ;;  %v4132_v48 = vpack.c.bf16 %v760_v43, %v760_v43  ;;  %v827_v50 = vsel %vm803_vm3, %v822_v38, %v826_v39  ;;  %v4162_v15 = vld [vmem:[%s4012_s10 + $0x20] sm:$0xff]  }
 0x1e4   : > { %2710 = vmatprep.mubr.msk.bf16.mxu0 %vm496_vm2, %v815_v45  ;;  %v855_v52 = vshll.u32 %v4126_v44, 16  ;;  %2790 = vmatprep.mubr.msk.bf16.mxu1 %vm496_vm2, %v827_v50  ;;  %v853_v1 = vshrl.u32 %v4126_v44, 16  ;;  %v860_v11 = vshll.u32 %v4134_v49, 16 }
 0x1e5   : > { %v2696_v55 = vpop.f32.mrb[12].mxu0  ;;  %2711 = vmatmul.mubr.msk.bf16.vlgmr.msra.gmra.mrb[16].mxu0 %vm496_vm2, %v827_v50  ;;  %v843_v58 = vshll.u32 %v4130_v47, 16  ;;  %v848_v59 = vshll.u32 %v4132_v48, 16  ;;  %2791 = vmatmul.mubr.msk.bf16.vlgmr.msra.gmra.mrb[4].mxu1 %vm496_vm2, %v4144_v56  ;;  %v841_v9 = vshrl.u32 %v4130_v47, 16 }
 0x1e6   : > { %v649_v60 = vadd.f32 %v2696_v55, %v633_v46  ;;  %v603_v61 = vpop.f32.mrb[13].mxu0  ;;  %2714 = vmatprep.mubr.msk.bf16.mxu0 %vm496_vm2, %v4144_v56  ;;  %v857_v4 = vrot.slane %v855_v52, 1  ;;  %2807 = vmatpush3.bf16.msra.mxu1 %v4083_v17  ;;  %v862_v29 = vrot.slane %v860_v11, 1 }
 0x1e7   : > { %v647_v6 = vadd.f32 %v631_v51, %v603_v61  ;;  %v2697_v8 = vpop.f32.mrb[14].mxu0  ;;  %v845_v10 = vrot.slane %v843_v58, 1  ;;  %2727 = vmatpush3.bf16.msra.mxu0 %v4087_v18  ;;  %2808 = vmatprep.subr.bf16.mxu1 %v3220_v53  ;;  %v850_v19 = vrot.slane %v848_v59, 1  ;;  %v767_v21 = vld [vmem:[#allocation2 + $0x90] sm:$0xff] }
 0x1e8   : > { %665 = vst.msk [vmem:[#allocation2 + $0xc1] sm:$0xff] %vm496_vm2, %v649_v60  ;;  %v650_v12 = vadd.f32 %v2697_v8, %v634_v57  ;;  %v606_v13 = vpop.f32.mrb[15].mxu0  ;;  %2728 = vmatprep.subr.bf16.mxu0 %v3222_v54  ;;  %v858_v20 = vor.u32 %v857_v4, %v853_v1  ;;  %v764_v18 = vld [vmem:[#allocation2 + $0x78] sm:$0xff] }
 0x1e9   : > { %663 = vst.msk [vmem:[#allocation2 + $0xa9] sm:$0xff] %vm496_vm2, %v647_v6  ;;  %v648_v17 = vadd.f32 %v632_v62, %v606_v13  ;;  %v846_v16 = vor.u32 %v845_v10, %v841_v9  ;;  %v768_v22 = vld [vmem:[#allocation2 + $0x98] sm:$0xff]  ;;  %v769_v23 = vld [vmem:[#allocation2 + $0xa0] sm:$0x3] }
 0x1ea   : > { %666 = vst.msk [vmem:[#allocation2 + $0xc9] sm:$0xff] %vm496_vm2, %v650_v12  ;;  %v765_v24 = vld [vmem:[#allocation2 + $0x80] sm:$0xff]  ;;  %v766_v25 = vld [vmem:[#allocation2 + $0x88] sm:$0x3]  ;;  %v4166_v26 = vpack.c.bf16 %v768_v22, %v767_v21  ;;  %v4168_v27 = vpack.c.bf16 %v769_v23, %v769_v23  ;;  %2809 = vmatpush3.bf16.msra.mxu1 %v3220_v53  ;;  %v4185_v33 = vsel %vm803_vm3, %v858_v20, %v862_v29  ;;  %v1186_v23 = vrot.slane %v4101_v63, 1 }
 0x1eb   : > { %664 = vst.msk [vmem:[#allocation2 + $0xb1] sm:$0xff] %vm496_vm2, %v648_v17  ;;  %v4172_v28 = vsel %vm803_vm3, %v846_v16, %v850_v19  ;;  %v4174_v30 = vpack.c.bf16 %v765_v24, %v764_v18  ;;  %v4176_v31 = vpack.c.bf16 %v766_v25, %v766_v25  ;;  %2729 = vmatpush3.bf16.msra.mxu0 %v3222_v54  ;;  %v1183_v16 = vrot.slane %v4110_v5, 1  ;;  %v3224_v29 = vld [vmem:[%s4012_s10 + $0x68] sm:$0xff]  }
 0x1ec   : > { %2794 = vmatprep.mubr.msk.bf16.mxu1 %vm496_vm2, %v4172_v28  ;;  %v879_v32 = vshll.u32 %v4166_v26, 16  ;;  %2826 = vmatprep.subr.bf16.mxu1 %v4159_v14  ;;  %v884_v37 = vshll.u32 %v4168_v27, 16  ;;  %v877_v40 = vshrl.u32 %v4166_v26, 16  ;;  %v1184_v19 = vrot.slane %v4112_v7, 1 }
 0x1ed   : > { %2715 = vmatmul.mubr.msk.bf16.gmra.mrb[20].mxu0 %vm496_vm2, %v4172_v28  ;;  %v867_v34 = vshll.u32 %v4174_v30, 16  ;;  %v872_v35 = vshll.u32 %v4176_v31, 16  ;;  %2746 = vmatprep.subr.bf16.mxu0 %v4162_v15  ;;  %v865_v38 = vshrl.u32 %v4174_v30, 16  ;;  %v1187_v18 = vrot.slane %v4103_v0, 1 }
 0x1ee   : > { %2795 = vmatmul.mubr.msk.bf16.gmra.mrb[8].mxu1 %vm496_vm2, %v4185_v33  ;;  %2718 = vmatprep.mubr.msk.bf16.mxu0 %vm496_vm2, %v4185_v33  ;;  %v881_v36 = vrot.slane %v879_v32, 1  ;;  %v886_v51 = vrot.slane %v884_v37, 1  ;;  %v1185_v7 = vsel %vm1179_vm4, %v1183_v16, %v1184_v19  ;;  %v1189_v24 = vrot.slane %v4130_v47, 1  ;;  %v3229_v37 = vld [vmem:[%s4012_s10 + $0x30] sm:$0xff]  }
 0x1ef   : > { %v869_v39 = vrot.slane %v867_v34, 1  ;;  %v874_v42 = vrot.slane %v872_v35, 1  ;;  %v773_v45 = vld [vmem:[#allocation2 + $0xc0] sm:$0xff]  ;;  %v1190_v25 = vrot.slane %v4132_v48, 1  ;;  %v4251_v32 = vsel %vm1179_vm4, %v1186_v23, %v1187_v18  ;;  %v3226_v34 = vld [vmem:[%s4012_s10 + $0x28] sm:$0xff]  }
 0x1f0   : > { %v882_v43 = vor.u32 %v881_v36, %v877_v40  ;;  %v770_v52 = vld [vmem:[#allocation2 + $0xa8] sm:$0xff]  ;;  %v3227_v48 = vld [vmem:[%s4012_s10 + $0x70] sm:$0xff]   ;;  %v1192_v35 = vrot.slane %v4126_v44, 1  ;;  %v1193_v36 = vrot.slane %v4134_v49, 1 }
 0x1f1   : > { %v870_v41 = vor.u32 %v869_v39, %v865_v38  ;;  %v774_v46 = vld [vmem:[#allocation2 + $0xc8] sm:$0xff]  ;;  %v775_v50 = vld [vmem:[#allocation2 + $0xd0] sm:$0x3]  ;;  %v4259_v0 = vsel %vm1179_vm4, %v1189_v24, %v1190_v25  ;;  %v1195_v38 = vrot.slane %v4174_v30, 1  ;;  %v1196_v39 = vrot.slane %v4176_v31, 1 }
 0x1f2   : > { %v771_v53 = vld [vmem:[#allocation2 + $0xb0] sm:$0xff]  ;;  %v772_v54 = vld [vmem:[#allocation2 + $0xb8] sm:$0x3]  ;;  %v4197_v55 = vpack.c.bf16 %v774_v46, %v773_v45  ;;  %v4206_v60 = vpack.c.bf16 %v775_v50, %v775_v50  ;;  %v4214_v62 = vsel %vm803_vm3, %v882_v43, %v886_v51  ;;  %v1199_v31 = vrot.slane %v4168_v27, 1 }
 0x1f3   : > { %v4200_v57 = vsel %vm803_vm3, %v870_v41, %v874_v42  ;;  %v4202_v58 = vpack.c.bf16 %v771_v53, %v770_v52  ;;  %v4204_v59 = vpack.c.bf16 %v772_v54, %v772_v54  ;;  %v4281_v49 = vsel %vm1179_vm4, %v1195_v38, %v1196_v39  ;;  %v3231_v53 = vld [vmem:[%s4012_s10 + $0x80] sm:$0xff]   ;;  %v776_v54 = vld [vmem:[#allocation2 + $0xd8] sm:$0xff] }
 0x1f4   : > { %2798 = vmatprep.mubr.msk.bf16.mxu1 %vm496_vm2, %v4200_v57  ;;  %v1493_v61 = vshll.u32 %v4197_v55, 16  ;;  %v1491_v10 = vshrl.u32 %v4197_v55, 16  ;;  %v1498_v11 = vshll.u32 %v4206_v60, 16  ;;  %v1637_v43 = vrot.slane %v4197_v55, 1 }
 0x1f5   : > { %2719 = vmatmul.mubr.msk.bf16.gmra.mrb[24].mxu0 %vm496_vm2, %v4200_v57  ;;  %v891_v1 = vshll.u32 %v4202_v58, 16  ;;  %v896_v4 = vshll.u32 %v4204_v59, 16  ;;  %v889_v8 = vshrl.u32 %v4202_v58, 16  ;;  %v1201_v40 = vrot.slane %v4202_v58, 1 }
 0x1f6   : > { %2799 = vmatmul.mubr.msk.bf16.gmra.mrb[12].mxu1 %vm496_vm2, %v4214_v62  ;;  %2722 = vmatprep.mubr.msk.bf16.mxu0 %vm496_vm2, %v4214_v62  ;;  %v1495_v6 = vrot.slane %v1493_v61, 1  ;;  %v1500_v21 = vrot.slane %v1498_v11, 1  ;;  %v1202_v41 = vrot.slane %v4204_v59, 1  ;;  %v1638_v45 = vrot.slane %v4206_v60, 1  ;;  %v777_v59 = vld [vmem:[#allocation2 + $0xe0] sm:$0xff]  ;;  %v3232_v61 = vld [vmem:[%s4012_s10 + $0x88] sm:$0xff]  }
 0x1f7   : > { %v893_v9 = vrot.slane %v891_v1, 1  ;;  %v898_v13 = vrot.slane %v896_v4, 1  ;;  %v1180_v46 = vrot.slane %v4106_v2, 1  ;;  %v1181_v50 = vrot.slane %v4108_v3, 1  ;;  %v3230_v3 = vld [vmem:[%s4012_s10 + $0x38] sm:$0xff]  }
 0x1f8   : > { %v1496_v17 = vor.u32 %v1495_v6, %v1491_v10  ;;  %v4299_v27 = vsel %vm1179_vm4, %v1201_v40, %v1202_v41  ;;  %v4310_v51 = vsel %vm1179_vm4, %v1637_v43, %v1638_v45  ;;  %v797_v60 = vpack.c.bf16 %v777_v59, %v776_v54 }
 0x1f9   : > { %v894_v12 = vor.u32 %v893_v9, %v889_v8  ;;  %v1182_v52 = vsel %vm1179_vm4, %v1180_v46, %v1181_v50 }
 0x1fa   : > { %v4235_v22 = vsel %vm803_vm3, %v1496_v17, %v1500_v21 }
 0x1fb   : > { %v4228_v20 = vsel %vm803_vm3, %v894_v12, %v898_v13 }
 0x1fc   : > { %2802 = vmatprep.mubr.msk.bf16.mxu1 %vm496_vm2, %v4228_v20 }
 0x1fd   : > { %2723 = vmatmul.mubr.msk.bf16.gmra.mrb[28].mxu0 %vm496_vm2, %v4228_v20 }
 0x1fe   : > { %2803 = vmatmul.mubr.msk.bf16.gmra.mrb[16].mxu1 %vm496_vm2, %v4235_v22  ;;  %2730 = vmatprep.mubr.msk.bf16.mxu0 %vm496_vm2, %v4106_v2  ;;  %v3228_v2 = vld [vmem:[%s4012_s10 + $0x78] sm:$0xff]   ;;  %s4629_s10 = sld [smem:[#allocation38_spill]] }
 0x1ff   : > { %2810 = vmatprep.mubr.msk.bf16.mxu1 %vm496_vm2, %v1185_v7 }
 0x204   : > { %s4433_s4 = scalar_lea.hbm %s4629_s10, %s2568_s1 }
 0x205   : > { %2731 = vmatmul.mubr.msk.bf16.vlgmr.msra.gmra.mrb[16].mxu0 %vm496_vm2, %v4110_v5 }
 0x206   : > { %2811 = vmatmul.mubr.msk.bf16.vlgmr.msra.gmra.mrb[4].mxu1 %vm496_vm2, %v4251_v32  ;;  %2734 = vmatprep.mubr.msk.bf16.mxu0 %vm496_vm2, %v4101_v63 }
 0x207   : > { %2827 = vmatpush3.bf16.msra.mxu1 %v4159_v14  ;;  %2814 = vmatprep.mubr.msk.bf16.mxu1 %vm496_vm2, %v4259_v0  ;;  %v4274_v14 = vsel %vm1179_vm4, %v1192_v35, %v1193_v36 }
 0x208   : > { %2828 = vmatprep.subr.bf16.mxu1 %v3224_v29  ;;  %2747 = vmatpush3.bf16.msra.mxu0 %v4162_v15  ;;  %v1198_v15 = vrot.slane %v4166_v26, 1 }
 0x209   : > { %2748 = vmatprep.subr.bf16.mxu0 %v3226_v34 }
 0x20a   : > { %v4292_v42 = vsel %vm1179_vm4, %v1198_v15, %v1199_v31 }
 0x20b   : > { %2829 = vmatpush3.bf16.msra.mxu1 %v3224_v29 }
 0x20c   : > { %2749 = vmatpush3.bf16.msra.mxu0 %v3226_v34  ;;  %2846 = vmatprep.subr.bf16.mxu1 %v3227_v48 }
 0x20d   : > { %2735 = vmatmul.mubr.msk.bf16.gmra.mrb[20].mxu0 %vm496_vm2, %v4130_v47  ;;  %2766 = vmatprep.subr.bf16.mxu0 %v3229_v37 }
 0x20e   : > { %2815 = vmatmul.mubr.msk.bf16.gmra.mrb[8].mxu1 %vm496_vm2, %v4274_v14  ;;  %2738 = vmatprep.mubr.msk.bf16.mxu0 %vm496_vm2, %v4126_v44 }
 0x20f   : > { %2818 = vmatprep.mubr.msk.bf16.mxu1 %vm496_vm2, %v4281_v49 }
 0x215   : > { %2739 = vmatmul.mubr.msk.bf16.gmra.mrb[24].mxu0 %vm496_vm2, %v4174_v30 }
 0x216   : > { %2819 = vmatmul.mubr.msk.bf16.gmra.mrb[12].mxu1 %vm496_vm2, %v4292_v42  ;;  %2742 = vmatprep.mubr.msk.bf16.mxu0 %vm496_vm2, %v4166_v26 }
 0x217   : > { %2822 = vmatprep.mubr.msk.bf16.mxu1 %vm496_vm2, %v4299_v27 }
 0x21d   : > { %2743 = vmatmul.mubr.msk.bf16.gmra.mrb[28].mxu0 %vm496_vm2, %v4202_v58 }
 0x21e   : > { %2823 = vmatmul.mubr.msk.bf16.gmra.mrb[16].mxu1 %vm496_vm2, %v4310_v51  ;;  %2750 = vmatprep.mubr.msk.bf16.mxu0 %vm496_vm2, %v1182_v52 }
 0x21f   : > { %2830 = vmatprep.mubr.msk.bf16.mxu1 %vm496_vm2, %v4101_v63 }
 0x225   : > { %2751 = vmatmul.mubr.msk.bf16.vlgmr.msra.gmra.mrb[16].mxu0 %vm496_vm2, %v1185_v7 }
 0x226   : > { %2831 = vmatmul.mubr.msk.bf16.vlgmr.msra.gmra.mrb[4].mxu1 %vm496_vm2, %v4130_v47  ;;  %2754 = vmatprep.mubr.msk.bf16.mxu0 %vm496_vm2, %v4251_v32 }
 0x227   : > { %2847 = vmatpush3.bf16.msra.mxu1 %v3227_v48  ;;  %2834 = vmatprep.mubr.msk.bf16.mxu1 %vm496_vm2, %v4126_v44 }
 0x228   : > { %2848 = vmatprep.subr.bf16.mxu1 %v3228_v2  ;;  %2767 = vmatpush3.bf16.msra.mxu0 %v3229_v37 }
 0x229   : > { %2768 = vmatprep.subr.bf16.mxu0 %v3230_v3 }
 0x22b   : > { %2849 = vmatpush3.bf16.msra.mxu1 %v3228_v2 }
 0x22c   : > { %2769 = vmatpush3.bf16.msra.mxu0 %v3230_v3  ;;  %2866 = vmatprep.subr.bf16.mxu1 %v3231_v53 }
 0x22d   : > { %2755 = vmatmul.mubr.msk.bf16.gmra.mrb[20].mxu0 %vm496_vm2, %v4259_v0 }
 0x22e   : > { %2835 = vmatmul.mubr.msk.bf16.gmra.mrb[8].mxu1 %vm496_vm2, %v4174_v30  ;;  %2758 = vmatprep.mubr.msk.bf16.mxu0 %vm496_vm2, %v4274_v14 }
 0x22f   : > { %2838 = vmatprep.mubr.msk.bf16.mxu1 %vm496_vm2, %v4166_v26 }
 0x235   : > { %2759 = vmatmul.mubr.msk.bf16.gmra.mrb[24].mxu0 %vm496_vm2, %v4281_v49 }
 0x236   : > { %2839 = vmatmul.mubr.msk.bf16.gmra.mrb[12].mxu1 %vm496_vm2, %v4202_v58  ;;  %2762 = vmatprep.mubr.msk.bf16.mxu0 %vm496_vm2, %v4292_v42 }
 0x237   : > { %2842 = vmatprep.mubr.msk.bf16.mxu1 %vm496_vm2, %v4197_v55 }
 0x23d   : > { %2763 = vmatmul.mubr.msk.bf16.gmra.mrb[28].mxu0 %vm496_vm2, %v4299_v27 }
 0x23e   : > { %2843 = vmatmul.mubr.msk.bf16.gmra.mrb[16].mxu1 %vm496_vm2, %v797_v60  ;;  %2770 = vmatprep.mubr.msk.bf16.mxu0 %vm496_vm2, %v4110_v5 }
 0x23f   : > { %2850 = vmatprep.mubr.msk.bf16.mxu1 %vm496_vm2, %v4144_v56  ;;  %v1906_v56 = vshrl.u32 %v797_v60, 16 }
 0x245   : > { %2771 = vmatmul.mubr.msk.bf16.vlgmr.msra.gmra.mrb[16].mxu0 %vm496_vm2, %v4101_v63  ;;  %v778_v63 = vld [vmem:[#allocation2 + $0xe8] sm:$0x3] }
 0x246   : > { %2851 = vmatmul.mubr.msk.bf16.vlgmr.msra.gmra.mrb[4].mxu1 %vm496_vm2, %v4172_v28  ;;  %2774 = vmatprep.mubr.msk.bf16.mxu0 %vm496_vm2, %v4130_v47  ;;  %v798_v5 = vpack.c.bf16 %v778_v63, %v778_v63  ;;  %v1908_v47 = vshll.u32 %v797_v60, 16 }
 0x247   : > { %2867 = vmatpush3.bf16.msra.mxu1 %v3231_v53  ;;  %2854 = vmatprep.mubr.msk.bf16.mxu1 %vm496_vm2, %v4185_v33 }
 0x248   : > { %2868 = vmatprep.subr.bf16.mxu1 %v3232_v61  ;;  %v1910_v28 = vrot.slane %v1908_v47, 1  ;;  %v1913_v33 = vshll.u32 %v798_v5, 16 }
 0x24b   : > { %2869 = vmatpush3.bf16.msra.mxu1 %v3232_v61 }
 0x24d   : > { %2775 = vmatmul.mubr.msk.bf16.gmra.mrb[20].mxu0 %vm496_vm2, %v4126_v44  ;;  %v1911_v44 = vor.u32 %v1910_v28, %v1906_v56 }
 0x24e   : > { %2855 = vmatmul.mubr.msk.bf16.gmra.mrb[8].mxu1 %vm496_vm2, %v4200_v57  ;;  %2778 = vmatprep.mubr.msk.bf16.mxu0 %vm496_vm2, %v4174_v30  ;;  %v1915_v30 = vrot.slane %v1913_v33, 1 }
 0x24f   : > { %2858 = vmatprep.mubr.msk.bf16.mxu1 %vm496_vm2, %v4214_v62 }
 0x250   : > { %v1916_v57 = vsel %vm803_vm3, %v1911_v44, %v1915_v30 }
 0x255   : > { %2779 = vmatmul.mubr.msk.bf16.gmra.mrb[24].mxu0 %vm496_vm2, %v4166_v26  ;;  %v2052_v26 = vrot.slane %v797_v60, 1 }
 0x256   : > { %2859 = vmatmul.mubr.msk.bf16.gmra.mrb[12].mxu1 %vm496_vm2, %v4228_v20  ;;  %2782 = vmatprep.mubr.msk.bf16.mxu0 %vm496_vm2, %v4202_v58 }
 0x257   : > { %2862 = vmatprep.mubr.msk.bf16.mxu1 %vm496_vm2, %v4235_v22 }
 0x25d   : > { %2783 = vmatmul.mubr.msk.bf16.gmra.mrb[28].mxu0 %vm496_vm2, %v4197_v55  ;;  %v2053_v55 = vrot.slane %v798_v5, 1 }
 0x25e   : > { %2863 = vmatmul.mubr.msk.bf16.gmra.mrb[16].mxu1 %vm496_vm2, %v1916_v57 }
 0x25f   : > { %2870 = vmatprep.mubr.msk.bf16.mxu1 %vm496_vm2, %v4251_v32  ;;  %v2054_v58 = vsel %vm1179_vm4, %v2052_v26, %v2053_v55 }
 0x266   : > { %2871 = vmatmul.mubr.msk.bf16.vlgmr.msra.gmra.mrb[4].mxu1 %vm496_vm2, %v4259_v0 }
 0x267   : > { %2874 = vmatprep.mubr.msk.bf16.mxu1 %vm496_vm2, %v4274_v14 }
 0x26e   : > { %2875 = vmatmul.mubr.msk.bf16.gmra.mrb[8].mxu1 %vm496_vm2, %v4281_v49 }
 0x26f   : > { %2878 = vmatprep.mubr.msk.bf16.mxu1 %vm496_vm2, %v4292_v42 }
 0x276   : > { %2879 = vmatmul.mubr.msk.bf16.gmra.mrb[12].mxu1 %vm496_vm2, %v4299_v27 }
 0x277   : > { %2882 = vmatprep.mubr.msk.bf16.mxu1 %vm496_vm2, %v4310_v51 }
 0x27e   : > { %2883 = vmatmul.mubr.msk.bf16.gmra.mrb[16].mxu1 %vm496_vm2, %v2054_v58 }
 0x318   : > { %v2772_v62 = vpop.f32.mrb[16].mxu0 }
 0x319   : > { %v1412_v1 = vpop.f32.mrb[17].mxu0 }
 0x31a   : > { %v2773_v4 = vpop.f32.mrb[18].mxu0 }
 0x31b   : > { %v1415_v6 = vpop.f32.mrb[19].mxu0 }
 0x320   : > { %v2776_v8 = vpop.f32.mrb[20].mxu0 }
 0x321   : > { %v1428_v9 = vpop.f32.mrb[21].mxu0 }
 0x322   : > { %v2777_v10 = vpop.f32.mrb[22].mxu0 }
 0x323   : > { %v1431_v11 = vpop.f32.mrb[23].mxu0 }
 0x328   : > { %v2780_v12 = vpop.f32.mrb[24].mxu0 }
 0x329   : > { %v1444_v13 = vpop.f32.mrb[25].mxu0 }
 0x32a   : > { %v2781_v17 = vpop.f32.mrb[26].mxu0 }
 0x32b   : > { %v1447_v16 = vpop.f32.mrb[27].mxu0 }
 0x330   : > { %v2784_v19 = vpop.f32.mrb[28].mxu0 }
 0x331   : > { %v1460_v20 = vpop.f32.mrb[29].mxu0 }
 0x332   : > { %v2785_v21 = vpop.f32.mrb[30].mxu0 }
 0x333   : > { %v1463_v22 = vpop.f32.mrb[31].mxu0 }
 0x339   : > { %v2872_v7 = vpop.f32.mrb[4].mxu1 }
 0x33a   : > { %v2886_v23 = vadd.f32 %v2872_v7, %v2772_v62  ;;  %v2109_v18 = vpop.f32.mrb[5].mxu1 }
 0x33b   : > { %v2887_v24 = vadd.f32 %v2109_v18, %v1412_v1  ;;  %v2873_v25 = vpop.f32.mrb[6].mxu1 }
 0x33c   : > { %2190 = vst.msk [vmem:[%s4021_s9 + $0x10] sm:$0xff] %vm496_vm2, %v2886_v23  ;;  %v2888_v29 = vadd.f32 %v2873_v25, %v2773_v4  ;;  %v2112_v32 = vpop.f32.mrb[7].mxu1 }
 0x33d   : > { %2188 = vst.msk [vmem:[%s4021_s9] sm:$0xff] %vm496_vm2, %v2887_v24  ;;  %v2889_v34 = vadd.f32 %v2112_v32, %v1415_v6 }
 0x33e   : > { %2191 = vst.msk [vmem:[%s4021_s9 + $0x18] sm:$0xff] %vm496_vm2, %v2888_v29 }
 0x33f   : > { %2189 = vst.msk [vmem:[%s4021_s9 + $0x8] sm:$0xff] %vm496_vm2, %v2889_v34 }
 0x341   : > { %v2876_v0 = vpop.f32.mrb[8].mxu1 }
 0x342   : > { %v2890_v48 = vadd.f32 %v2876_v0, %v2776_v8  ;;  %v2125_v35 = vpop.f32.mrb[9].mxu1 }
 0x343   : > { %v2891_v36 = vadd.f32 %v2125_v35, %v1428_v9  ;;  %v2877_v37 = vpop.f32.mrb[10].mxu1 }
 0x344   : > { %2194 = vst.msk [vmem:[%s4021_s9 + $0x30] sm:$0xff] %vm496_vm2, %v2890_v48  ;;  %v2892_v38 = vadd.f32 %v2877_v37, %v2777_v10  ;;  %v2128_v39 = vpop.f32.mrb[11].mxu1 }
 0x345   : > { %2192 = vst.msk [vmem:[%s4021_s9 + $0x20] sm:$0xff] %vm496_vm2, %v2891_v36  ;;  %v2893_v14 = vadd.f32 %v2128_v39, %v1431_v11 }
 0x346   : > { %2195 = vst.msk [vmem:[%s4021_s9 + $0x38] sm:$0xff] %vm496_vm2, %v2892_v38 }
 0x347   : > { %2193 = vst.msk [vmem:[%s4021_s9 + $0x28] sm:$0xff] %vm496_vm2, %v2893_v14 }
 0x349   : > { %v2880_v49 = vpop.f32.mrb[12].mxu1 }
 0x34a   : > { %v2894_v15 = vadd.f32 %v2880_v49, %v2780_v12  ;;  %v2141_v31 = vpop.f32.mrb[13].mxu1 }
 0x34b   : > { %v2895_v40 = vadd.f32 %v2141_v31, %v1444_v13  ;;  %v2881_v41 = vpop.f32.mrb[14].mxu1 }
 0x34c   : > { %2198 = vst.msk [vmem:[%s4021_s9 + $0x50] sm:$0xff] %vm496_vm2, %v2894_v15  ;;  %v2896_v42 = vadd.f32 %v2881_v41, %v2781_v17  ;;  %v2144_v27 = vpop.f32.mrb[15].mxu1 }
 0x34d   : > { %2196 = vst.msk [vmem:[%s4021_s9 + $0x40] sm:$0xff] %vm496_vm2, %v2895_v40  ;;  %v2897_v43 = vadd.f32 %v2144_v27, %v1447_v16 }
 0x34e   : > { %2199 = vst.msk [vmem:[%s4021_s9 + $0x58] sm:$0xff] %vm496_vm2, %v2896_v42 }
 0x34f   : > { %2197 = vst.msk [vmem:[%s4021_s9 + $0x48] sm:$0xff] %vm496_vm2, %v2897_v43 }
 0x351   : > { %v2884_v45 = vpop.f32.mrb[16].mxu1 }
 0x352   : > { %v2898_v46 = vadd.f32 %v2884_v45, %v2784_v19  ;;  %v2157_v50 = vpop.f32.mrb[17].mxu1 }
 0x353   : > { %v2899_v51 = vadd.f32 %v2157_v50, %v1460_v20  ;;  %v2885_v52 = vpop.f32.mrb[18].mxu1 }
 0x354   : > { %2202 = vst.msk [vmem:[%s4021_s9 + $0x70] sm:$0xff] %vm496_vm2, %v2898_v46  ;;  %v2900_v2 = vadd.f32 %v2885_v52, %v2785_v21  ;;  %v2160_v3 = vpop.f32.mrb[19].mxu1 }
 0x355   : > { %2200 = vst.msk [vmem:[%s4021_s9 + $0x60] sm:$0xff] %vm496_vm2, %v2899_v51  ;;  %v2901_v53 = vadd.f32 %v2160_v3, %v1463_v22 }
 0x356   : > { %2203 = vst.msk [vmem:[%s4021_s9 + $0x78] sm:$0xff] %vm496_vm2, %v2900_v2 }
 0x357   : > { %2201 = vst.msk [vmem:[%s4021_s9 + $0x68] sm:$0xff] %vm496_vm2, %v2901_v53 }
 0x358   : > { %3366 = shalt.err (!%p3363_p8)
}
 0x359   : > { %s3367_s13 = scalar_lea.hbm %s4433_s4, 2048  ;;  %s3371_s11 = scalar_lea.hbm %s4629_s10, 32768 }
 0x35a   : > { %p3368_p10 = scmp.ne.s32.totalorder %s4433_s4, %s3367_s13  ;;  %p3372_p1 = scmp.lt.u32.totalorder %s4433_s4, %s4629_s10 }
 0x35b   : > { %p3373_p13 = scmp.lt.u32.totalorder %s3371_s11, %s3367_s13  ;;  %p3375_p0 = scmp.lt.u32.totalorder %s3367_s13, %s4433_s4 }
 0x35c   : > { %p3369_p4 = pnand %p3368_p10, %p4630_p2 }
 0x35d   : > { %p3374_p9 = por %p3373_p13, %p3372_p1 }
 0x35e   : > { %p3370_p11 = pneg %p3369_p4 }
 0x35f   : > { %p3376_p3 = por %p3375_p0, %p3374_p9 }
 0x361   : > { %p3377_p7 = pnand %p3376_p3, %p3370_p11 }
 0x363   : > { %3380 = shalt.err (!%p3377_p7)
}
 0x364   : > { %s3561_s30 = smov 128   ;;  %s3562_s26 = smov 8  }
 0x365   : > { %3025 = dma.vmem_to_hbm [thread:$0]  (%p4630_p2), %s4426_s28, 2048, %s4433_s4, %s4441_s21, %s3561_s30, %s3561_s30, %s3562_s26  }
 0x366 PF: > { %s4631_s1 = sld [smem:[#allocation17_spill]]  ;;  %s4632_s25 = sld [smem:[#allocation35_spill]] }
 0x367   : > { %p3045_p5 = scmp.ge.s32.totalorder %s3551_s7, 2 }
 0x36c   : > { %s2238_s29 = sand.u32 1, %s4631_s1   ;;  %p4633_p6 = scmp.ne.s32.totalorder %s4632_s25, 0 }
 0x36d   : > { %s2239_s27 = scalar_lea.sflag [#allocation5], %s2238_s29 }
 0x36e   : > { %p3041_p12 = pnand %p3045_p5, %p4633_p6 }
 0x370   : > { %3474 = dma.done.wait (!%p3041_p12), %s2239_s27, 2048  }
 0x371   : > { %3476 = vsyncadd (!%p3041_p12), %s2239_s27, 4294965248  ;;  %s26_s7 = sadd.s32 1, %s3551_s7   ;;  %s4636_s15 = sld [smem:[#allocation18_spill]] }
 0x372   : > { %p4470_p8 = scmp.ge.s32.totalorder %s26_s7, 18   ;;  %s4637_s16 = sld [smem:[#allocation19_spill]] }
 0x373   : > { %s4638_s28 = sld [smem:[#allocation33_spill]]  ;;  %s4640_s8 = smov %s3931_s17 }
 0x374   : > { %s4639_s18 = sld [smem:[#allocation21_spill]]  ;;  %s4641_s4 = sld [smem:[#allocation22_spill]] }
 0x375   : > { %s4642_s25 = sld [smem:[#allocation23_spill]]  ;;  %s4643_s26 = sld [smem:[#allocation32_spill]] }
 0x376   : > { %s4644_s27 = sld [smem:[#allocation27_spill]]  ;;  %s4645_s30 = sld [smem:[#allocation28_spill]] }
 0x377   : > { %s4646_s13 = sld [smem:[#allocation29_spill]]  ;;  %s4647_s9 = sld [smem:[#allocation30_spill]] }
 0x378   : > { %s4650_s19 = smov %s3499_s20  ;;  %s4651_s20 = smov %s4640_s8 }
 0x379   : > { %s4648_s17 = smov %s4638_s28  ;;  %s4652_s21 = smov %s3507_s22 }
 0x37a   : > { %s4653_s22 = smov %s3511_s23  ;;  %s4654_s23 = smov %s3868_s12 }
 0x37b   : > { %s4655_s24 = smov %s4641_s4  ;;  %s4656_s28 = smov %s3543_s5 }
 0x37c   : > { %s4657_s29 = smov %s3547_s6  ;;  %25 = sbr.rel (!%p4470_p8) target bundleno = 21 (0x15), region = 132 }
 0x37d   : > { %s4658_s5 = smov %s4646_s13  ;;  %s4659_s6 = smov %s4647_s9 }
 0x383   :  { %2244 = vsyncpa [#allocation4], 1 }
 0x384   :  { %2246 = vsyncpa [#allocation4 + $0x1], 1 }
 0x385   :  { %2247 = vsyncpa [#allocation7], 1 }
 0x386   :  { %2249 = vsyncpa [#allocation7 + $0x1], 1 }
 0x387   :  { %2250 = vsyncpa [#allocation10], 1 }
 0x388   :  { %2252 = vsyncpa [#allocation10 + $0x1], 1 }
 0x389   :  { %2253 = vsyncpa [#allocation5], 1 }
 0x38a   :  { %2255 = vsyncpa [#allocation5 + $0x1], 1 }

</bundles_post_ra>
